<compile_context>
chip_gen: v7x
topology: tpu7x:2x2x1
jax: 0.10.0
libtpu: 0.0.40
codegen_flags: <defaults>
</compile_context>

<pallas_src>
import functools

import jax
import jax.numpy as jnp
from jax.experimental import pallas as pl
from jax.experimental.pallas import tpu as pltpu

C_IN = 273            # per-point feature dim (hardcoded in the PyTorch module)
C_MID = 2 * C_IN      # 546
ENCODER_CHANNEL = 128
BN_EPS = 1e-5


def _encoder_kernel(x_ref, w1g_ref, w1x_ref, shift_ref, w2_ref, out_ref, *,
                    n_chunk):
    # x_ref block: (g_tile, n_pad, 273) bf16 -- g_tile point groups per step.
    gt, npts, cin = x_ref.shape
    enc = out_ref.shape[-1]
    n_chunks = npts // n_chunk
    unroll = n_chunks <= 8

    # --- Per-group global feature: running max over point chunks (bf16). ---
    def fg_body(c, fg):
        off = pl.multiple_of(c * n_chunk, 8)
        xc = x_ref[:, pl.ds(off, n_chunk), :]            # (gt, nc, 273) bf16
        return jnp.maximum(fg, jnp.max(xc, axis=1))

    fg = jax.lax.fori_loop(
        0, n_chunks, fg_body,
        jnp.full((gt, cin), -jnp.inf, dtype=x_ref.dtype), unroll=unroll)

    # Global-feature half of conv1 (BN scale folded into W1g); the (bias + BN
    # shift) is folded here once per group instead of once per point.
    y_gs = jnp.dot(fg, w1g_ref[...], preferred_element_type=jnp.float32)
    y_gs = y_gs + shift_ref[...]                          # (gt, 546) f32
    # Hoisted broadcast (JAX does not CSE broadcast_in_dim inside loops).
    y_gs_flat = jnp.broadcast_to(
        y_gs[:, None, :], (gt, n_chunk, C_MID)).reshape(gt * n_chunk, C_MID)

    # --- Main loop: conv1 -> ReLU -> conv2 per point chunk, running max. ---
    def body(c, acc):
        off = pl.multiple_of(c * n_chunk, 8)
        xc = x_ref[:, pl.ds(off, n_chunk), :]             # (gt, nc, 273) bf16
        xf = xc.reshape(gt * n_chunk, cin)
        y = jnp.dot(xf, w1x_ref[...],
                    preferred_element_type=jnp.float32)   # (gt*nc, 546)
        y = jnp.maximum(y + y_gs_flat, 0.0).astype(jnp.bfloat16)
        z = jnp.dot(y, w2_ref[...],
                    preferred_element_type=jnp.float32)   # (gt*nc, enc)
        z = z.reshape(gt, n_chunk, enc)
        return jnp.maximum(acc, jnp.max(z, axis=1))

    acc = jax.lax.fori_loop(
        0, n_chunks, body,
        jnp.full((gt, enc), -jnp.inf, dtype=jnp.float32), unroll=unroll)

    out_ref[...] = acc                                    # lane-dense (gt, enc)


def _pick_g_tile(B, n_pad, *, max_rows=2048, target_rows=1024):
    """Group tile: multiple of 8 (sublane-dense output), >=2 grid steps if possible."""
    if B <= 8:
        return B  # block dim == full array dim is allowed by the (8,128) rule
    cap = max(8, (max_rows // max(n_pad, 1)) // 8 * 8)      # row cap
    tgt = ((max(1, -(-target_rows // n_pad)) + 7) // 8) * 8  # fill MXU M dim
    half = max(8, (B // 2) // 8 * 8)                         # >=2 steps (v7x megacore)
    return max(8, min(cap, tgt, half))


def _pick_n_chunk(n_pad, g_tile, *, chunk_rows=512):
    """Largest multiple-of-8 divisor of n_pad with g_tile*n_chunk <= chunk_rows."""
    best = 8
    for d in range(8, n_pad + 1, 8):
        if n_pad % d == 0 and g_tile * d <= chunk_rows:
            best = d
    return best


def encoder_forward(point_groups, params, *, max_rows=2048):
    """point_groups: (bs, g, n, 273) float32 -> (bs, g, encoder_channel)."""
    bs, g, n, c = point_groups.shape
    assert c == C_IN
    B = bs * g
    enc = params["w2"].shape[0]

    # Stream x as bf16 (halves the dominant HBM stream; f32 MXU accumulation).
    x = point_groups.reshape(B, n, C_IN).astype(jnp.bfloat16)

    # Pad the point dim to a multiple of 8 by replicating point 0: duplicates do
    # not change either max-pool, and keep in-kernel reshapes relayout-free.
    n_pad = ((n + 7) // 8) * 8
    if n_pad != n:
        pad = jnp.broadcast_to(x[:, :1, :], (B, n_pad - n, C_IN))
        x = jnp.concatenate([x, pad], axis=1)

    g_tile = _pick_g_tile(B, n_pad, max_rows=max_rows)
    # Pad the group dim so it divides evenly into sublane-dense tiles; padded
    # groups (copies of group 0) are sliced off the output.
    B_pad = ((B + g_tile - 1) // g_tile) * g_tile
    if B_pad != B:
        padg = jnp.broadcast_to(x[:1], (B_pad - B, n_pad, C_IN))
        x = jnp.concatenate([x, padg], axis=0)
    grid = (B_pad // g_tile,)
    n_chunk = _pick_n_chunk(n_pad, g_tile)

    # Fold eval-mode BatchNorm into the first conv.
    inv_std = 1.0 / jnp.sqrt(params["bn_var"] + BN_EPS)
    scale = params["bn_gamma"] * inv_std                         # (546,)
    # 1x1 conv: PyTorch (C_out, C_in, 1) -> (C_in, C_out), scale per C_out.
    w1t = jnp.transpose(params["w1"][:, :, 0]) * scale[None, :]  # (546, 546)
    shift = ((params["b1"] - params["bn_mean"]) * scale + params["bn_beta"]
             ).reshape(1, C_MID).astype(jnp.float32)
    # Concat order in the reference is [feature_global, x]:
    w1t_g = w1t[:C_IN, :].astype(jnp.bfloat16)                   # (273, 546)
    w1t_x = w1t[C_IN:, :].astype(jnp.bfloat16)                   # (273, 546)
    w2t = jnp.transpose(params["w2"][:, :, 0]).astype(jnp.bfloat16)  # (546, enc)

    # Explicit VMEM budget (double-buffered I/O + in-kernel live set), with
    # margin; >= 32 MiB, capped at 48 MiB (v7x has 64 MiB physical VMEM).
    rows_chunk = g_tile * n_chunk
    vmem_est = (
        2 * g_tile * n_pad * C_IN * 2                       # x double-buffer (bf16)
        + 2 * g_tile * enc * 4                              # out double-buffer
        + 2 * (2 * C_IN * C_MID * 2 + C_MID * enc * 2 + C_MID * 4)  # weights/shift
        + rows_chunk * (C_MID * 4 + C_MID * 2 + enc * 4 + C_IN * 2)  # chunk live set
        + g_tile * (C_MID * 4 + C_IN * 2 + enc * 4)         # fg / y_gs / acc
    )
    vmem_limit = int(min(48 * 2**20, max(32 * 2**20, 2 * vmem_est)))

    flops = int(2 * B_pad * n_pad * (C_IN * C_MID + C_MID * enc)
                + 2 * B_pad * C_IN * C_MID)
    bytes_accessed = int(B_pad * n_pad * C_IN * 2                 # bf16 x stream
                         + (w1t_g.size + w1t_x.size + w2t.size) * 2
                         + shift.size * 4
                         + B_pad * enc * 4)                       # output

    kernel = functools.partial(_encoder_kernel, n_chunk=n_chunk)

    out = pl.pallas_call(
        kernel,
        out_shape=jax.ShapeDtypeStruct((B_pad, enc), jnp.float32),
        grid_spec=pltpu.PrefetchScalarGridSpec(
            num_scalar_prefetch=0,
            grid=grid,
            in_specs=[
                pl.BlockSpec((g_tile, n_pad, C_IN), lambda b: (b, 0, 0)),
                pl.BlockSpec((C_IN, C_MID), lambda b: (0, 0)),
                pl.BlockSpec((C_IN, C_MID), lambda b: (0, 0)),
                pl.BlockSpec((1, C_MID), lambda b: (0, 0)),
                pl.BlockSpec((C_MID, enc), lambda b: (0, 0)),
            ],
            out_specs=pl.BlockSpec((g_tile, enc), lambda b: (b, 0)),
        ),
        compiler_params=pltpu.CompilerParams(
            dimension_semantics=("parallel",),
            vmem_limit_bytes=vmem_limit),
        cost_estimate=pl.CostEstimate(
            flops=flops, transcendentals=0, bytes_accessed=bytes_accessed),
    )(x, w1t_g, w1t_x, shift, w2t)

    # Drop padded groups; second conv bias: max_n(z + b2) == max_n(z) + b2.
    out = out[:B] + params["b2"][None, :]
    return out.reshape(bs, g, enc)


def init_params(key, encoder_channel=ENCODER_CHANNEL):
    k1, k2, k3, k4 = jax.random.split(key, 4)
    return {
        "w1": 0.05 * jax.random.normal(k1, (C_MID, C_MID, 1), jnp.float32),
        "b1": 0.01 * jax.random.normal(k2, (C_MID,), jnp.float32),
        "bn_gamma": jnp.ones((C_MID,), jnp.float32),
        "bn_beta": jnp.zeros((C_MID,), jnp.float32),
        "bn_mean": jnp.zeros((C_MID,), jnp.float32),
        "bn_var": jnp.ones((C_MID,), jnp.float32),
        "w2": 0.05 * jax.random.normal(k3, (encoder_channel, C_MID, 1), jnp.float32),
        "b2": 0.01 * jax.random.normal(k4, (encoder_channel,), jnp.float32),
    }


def encoder_reference(point_groups, params):
    """Plain-JAX reference mirroring the PyTorch forward (eval-mode BN, f32)."""
    bs, g, n, _ = point_groups.shape
    x = point_groups.reshape(bs * g, n, C_IN)             # (B, n, 273)
    xt = jnp.transpose(x, (0, 2, 1))                      # (B, 273, n)
    fg = jnp.max(xt, axis=2, keepdims=True)               # (B, 273, 1)
    feat = jnp.concatenate(
        [jnp.broadcast_to(fg, xt.shape), xt], axis=1)     # (B, 546, n)
    w1 = params["w1"][:, :, 0]
    y = jnp.einsum("oc,bcn->bon", w1, feat) + params["b1"][None, :, None]
    inv_std = 1.0 / jnp.sqrt(params["bn_var"] + BN_EPS)
    y = (y - params["bn_mean"][None, :, None]) * inv_std[None, :, None]
    y = y * params["bn_gamma"][None, :, None] + params["bn_beta"][None, :, None]
    y = jnp.maximum(y, 0.0)
    w2 = params["w2"][:, :, 0]
    z = jnp.einsum("oc,bcn->bon", w2, y) + params["b2"][None, :, None]
    out = jnp.max(z, axis=2)                              # (B, enc)
    return out.reshape(bs, g, -1)


if __name__ == "__main__":
    key = jax.random.PRNGKey(0)
    k_x, k_p = jax.random.split(key)

    bs, g, n = 2, 4, 8
    point_groups = jax.random.normal(k_x, (bs, g, n, C_IN), jnp.float32)
    params = init_params(k_p, ENCODER_CHANNEL)

    out = jax.block_until_ready(encoder_forward(point_groups, params))
    ref = jax.block_until_ready(encoder_reference(point_groups, params))

    assert out.shape == (bs, g, ENCODER_CHANNEL)
    max_err = float(jnp.max(jnp.abs(out - ref)))
    # bf16 MXU operands + bf16 x stream (f32 accumulation) -> looser tolerance
    # than the pure-f32 reference.
    assert jnp.allclose(out, ref, atol=5e-2, rtol=5e-2), max_err

    print("KERNEL_OK")
</pallas_src>

<mosaic_0001>
module attributes {stable_mosaic.version = 11 : i64} {
  func.func @_encoder_kernel(%arg0: i32, %arg1: memref<8x8x273xbf16, #tpu.memory_space<vmem>>, %arg2: memref<273x546xbf16, #tpu.memory_space<vmem>>, %arg3: memref<273x546xbf16, #tpu.memory_space<vmem>>, %arg4: memref<1x546xf32, #tpu.memory_space<vmem>>, %arg5: memref<546x128xbf16, #tpu.memory_space<vmem>>, %arg6: memref<8x128xf32, #tpu.memory_space<vmem>>) attributes {dimension_semantics = [#tpu.dimension_semantics<parallel>], iteration_bounds = array<i64: 1>, scalar_prefetch = 0 : i64, scratch_operands = 0 : i64, tpu.core_type = #tpu.core_type<tc>, window_params = [{transform_indices = @transform_0, window_bounds = array<i64: 8, 8, 273>}, {pipeline_mode = #tpu.pipeline_mode<synchronous>, transform_indices = @transform_1, window_bounds = array<i64: 273, 546>}, {pipeline_mode = #tpu.pipeline_mode<synchronous>, transform_indices = @transform_2, window_bounds = array<i64: 273, 546>}, {pipeline_mode = #tpu.pipeline_mode<synchronous>, transform_indices = @transform_3, window_bounds = array<i64: 1, 546>}, {pipeline_mode = #tpu.pipeline_mode<synchronous>, transform_indices = @transform_4, window_bounds = array<i64: 546, 128>}, {transform_indices = @transform_5, window_bounds = array<i64: 8, 128>}]} {
    %cst = arith.constant 0xFF80 : bf16
    %0 = vector.broadcast %cst : bf16 to vector<8x273xbf16>
    %c0_i32 = arith.constant 0 : i32
    %c8_i32 = arith.constant 8 : i32
    %1 = arith.muli %c0_i32, %c8_i32 : i32
    %2 = tpu.assume_multiple %1, 8 : i32
    %c0 = arith.constant 0 : index
    %3 = arith.index_cast %2 : i32 to index
    %c0_0 = arith.constant 0 : index
    %4 = vector.load %arg1[%c0, %3, %c0_0] : memref<8x8x273xbf16, #tpu.memory_space<vmem>>, vector<8x8x273xbf16>
    %cst_1 = arith.constant dense<0xFF80> : vector<8x273xbf16>
    %5 = vector.multi_reduction <maximumf>, %4, %cst_1 [1] : vector<8x8x273xbf16> to vector<8x273xbf16>
    %6 = arith.maximumf %0, %5 : vector<8x273xbf16>
    %c1_i32 = arith.constant 1 : i32
    %c0_2 = arith.constant 0 : index
    %c0_3 = arith.constant 0 : index
    %7 = vector.load %arg2[%c0_2, %c0_3] : memref<273x546xbf16, #tpu.memory_space<vmem>>, vector<273x546xbf16>
    %cst_4 = arith.constant dense<0.000000e+00> : vector<8x546xf32>
    %8 = tpu.matmul %6, %7, %cst_4 {dimension_numbers = #tpu.dot_dimension_numbers<[1], [0], [0], [1], [0, 0, 1, 1], [], []>} : vector<8x273xbf16>, vector<273x546xbf16>, vector<8x546xf32> -> vector<8x546xf32>
    %c0_5 = arith.constant 0 : index
    %c0_6 = arith.constant 0 : index
    %9 = vector.load %arg4[%c0_5, %c0_6] : memref<1x546xf32, #tpu.memory_space<vmem>>, vector<1x546xf32>
    %10 = vector.broadcast %9 : vector<1x546xf32> to vector<8x546xf32>
    %11 = arith.addf %8, %10 : vector<8x546xf32>
    %12 = vector.shape_cast %11 : vector<8x546xf32> to vector<8x1x546xf32>
    %13 = vector.shape_cast %12 : vector<8x1x546xf32> to vector<8x1x546xf32>
    %14 = vector.broadcast %13 : vector<8x1x546xf32> to vector<8x8x546xf32>
    %15 = vector.shape_cast %14 : vector<8x8x546xf32> to vector<64x546xf32>
    %cst_7 = arith.constant 0xFF800000 : f32
    %16 = vector.broadcast %cst_7 : f32 to vector<8x128xf32>
    %c0_i32_8 = arith.constant 0 : i32
    %c8_i32_9 = arith.constant 8 : i32
    %17 = arith.muli %c0_i32_8, %c8_i32_9 : i32
    %18 = tpu.assume_multiple %17, 8 : i32
    %c0_10 = arith.constant 0 : index
    %19 = arith.index_cast %18 : i32 to index
    %c0_11 = arith.constant 0 : index
    %20 = vector.load %arg1[%c0_10, %19, %c0_11] : memref<8x8x273xbf16, #tpu.memory_space<vmem>>, vector<8x8x273xbf16>
    %21 = vector.shape_cast %20 : vector<8x8x273xbf16> to vector<64x273xbf16>
    %c0_12 = arith.constant 0 : index
    %c0_13 = arith.constant 0 : index
    %22 = vector.load %arg3[%c0_12, %c0_13] : memref<273x546xbf16, #tpu.memory_space<vmem>>, vector<273x546xbf16>
    %cst_14 = arith.constant dense<0.000000e+00> : vector<64x546xf32>
    %23 = tpu.matmul %21, %22, %cst_14 {dimension_numbers = #tpu.dot_dimension_numbers<[1], [0], [0], [1], [0, 0, 1, 1], [], []>} : vector<64x273xbf16>, vector<273x546xbf16>, vector<64x546xf32> -> vector<64x546xf32>
    %24 = arith.addf %23, %15 : vector<64x546xf32>
    %cst_15 = arith.constant 0.000000e+00 : f32
    %25 = vector.broadcast %cst_15 : f32 to vector<64x546xf32>
    %26 = arith.maximumf %24, %25 : vector<64x546xf32>
    %27 = arith.truncf %26 : vector<64x546xf32> to vector<64x546xbf16>
    %c0_16 = arith.constant 0 : index
    %c0_17 = arith.constant 0 : index
    %28 = vector.load %arg5[%c0_16, %c0_17] : memref<546x128xbf16, #tpu.memory_space<vmem>>, vector<546x128xbf16>
    %cst_18 = arith.constant dense<0.000000e+00> : vector<64x128xf32>
    %29 = tpu.matmul %27, %28, %cst_18 {dimension_numbers = #tpu.dot_dimension_numbers<[1], [0], [0], [1], [0, 0, 1, 1], [], []>} : vector<64x546xbf16>, vector<546x128xbf16>, vector<64x128xf32> -> vector<64x128xf32>
    %30 = vector.shape_cast %29 : vector<64x128xf32> to vector<8x8x128xf32>
    %cst_19 = arith.constant dense<0xFF800000> : vector<8x128xf32>
    %31 = vector.multi_reduction <maximumf>, %30, %cst_19 [1] : vector<8x8x128xf32> to vector<8x128xf32>
    %32 = arith.maximumf %16, %31 : vector<8x128xf32>
    %c1_i32_20 = arith.constant 1 : i32
    %c0_21 = arith.constant 0 : index
    %c0_22 = arith.constant 0 : index
    %33 = vector.load %arg6[%c0_21, %c0_22] : memref<8x128xf32, #tpu.memory_space<vmem>>, vector<8x128xf32>
    tpu.vector_store %arg6[%c0_21, %c0_22], %32 {strides = array<i32>} : memref<8x128xf32, #tpu.memory_space<vmem>>, vector<8x128xf32>,
    return
  }
  func.func @transform_0(%arg0: i32) -> (i32, i32, i32) {
    %c0_i32 = arith.constant 0 : i32
    %c0_i32_0 = arith.constant 0 : i32
    %c0_i32_1 = arith.constant 0 : i32
    return %arg0, %c0_i32, %c0_i32_0 : i32, i32, i32
  }
  func.func @transform_1(%arg0: i32) -> (i32, i32) {
    %c0_i32 = arith.constant 0 : i32
    %c0_i32_0 = arith.constant 0 : i32
    %c0_i32_1 = arith.constant 0 : i32
    return %c0_i32, %c0_i32_0 : i32, i32
  }
  func.func @transform_2(%arg0: i32) -> (i32, i32) {
    %c0_i32 = arith.constant 0 : i32
    %c0_i32_0 = arith.constant 0 : i32
    %c0_i32_1 = arith.constant 0 : i32
    return %c0_i32, %c0_i32_0 : i32, i32
  }
  func.func @transform_3(%arg0: i32) -> (i32, i32) {
    %c0_i32 = arith.constant 0 : i32
    %c0_i32_0 = arith.constant 0 : i32
    %c0_i32_1 = arith.constant 0 : i32
    return %c0_i32, %c0_i32_0 : i32, i32
  }
  func.func @transform_4(%arg0: i32) -> (i32, i32) {
    %c0_i32 = arith.constant 0 : i32
    %c0_i32_0 = arith.constant 0 : i32
    %c0_i32_1 = arith.constant 0 : i32
    return %c0_i32, %c0_i32_0 : i32, i32
  }
  func.func @transform_5(%arg0: i32) -> (i32, i32) {
    %c0_i32 = arith.constant 0 : i32
    %c0_i32_0 = arith.constant 0 : i32
    return %arg0, %c0_i32 : i32, i32
  }
}

</mosaic_0001>

<bundles_post_ra>
// kernel: tpu_custom_call.1
= control target key start
LH: loop header
LB: loop body
LE: loop exit
PB: predicated region body
PF: predicated region fallthrough
CT: control target
= control target key end

     0   :  { %10 = vsyncpa [#allocation3], 0  ;;  %s4930_s0 = inlined_call_operand.hbm [shape: bf16[8,8,273], index: 0, kind: input, shape index: {}]   ;;  %s4931_s1 = inlined_call_operand.hbm [shape: bf16[273,546], index: 1, kind: input, shape index: {}]   ;;  %s4932_s2 = inlined_call_operand.hbm [shape: bf16[273,546], index: 2, kind: input, shape index: {}]   ;;  %s4933_s3 = inlined_call_operand.vmem [shape: f32[1,546], index: 3, kind: input, shape index: {}]   ;;  %s4934_s4 = inlined_call_operand.hbm [shape: bf16[546,128], index: 4, kind: input, shape index: {}]   ;;  %s4935_s5 = inlined_call_operand.hbm [shape: f32[8,128], index: 5, kind: output, shape index: {}]  }
   0x1   :  { %11 = vsyncpa [#allocation6], 0 }
   0x2   :  { %12 = vsyncpa [#allocation9], 0 }
   0x3   :  { %13 = vsyncpa [#allocation4], 0  ;;  %s4389_s18 = smov [#allocation5]   ;;  %s4271_s22 = scalar_lea.hbm %s4931_s1, 11200 }
   0x4   :  { %s31_s19 = sshll.u32 %s4389_s18, 4  ;;  %p4272_p0 = scmp.ne.s32.totalorder %s4931_s1, %s4271_s22  ;;  %s32_s19 = int_to_ptr.vmem [resolvable:$true] %s31_s19 }
   0x5   :  { %p4275_p1 = scmp.lt.u32.totalorder %s4271_s22, %s4931_s1 }
   0x7   :  { %p4277_p2 = pnand %p4275_p1, %p4272_p0 }
   0x9   :  { %4280 = shalt.err (!%p4277_p2)
}
   0xa   :  { %s4281_s27 = scalar_lea.vmem %s32_s19, 11200  ;;  %p4286_p4 = scmp.lt.s32.totalorder %s32_s19, %s32_s19 }
   0xb   :  { %p4282_p3 = scmp.ne.s32.totalorder %s32_s19, %s4281_s27  ;;  %p4287_p5 = scmp.lt.s32.totalorder %s4281_s27, %s4281_s27 }
   0xd   :  { %p4288_p6 = por %p4287_p5, %p4286_p4 }
   0xf   :  { %p4289_p7 = pnand %p4288_p6, %p4282_p3 }
  0x11   :  { %4292 = shalt.err (!%p4289_p7)
}
  0x12   :  { %s4390_s28 = smov 320   ;;  %s4391_s29 = smov 20  }
  0x13   :  { %37 = dma.hbm_to_vmem [thread:$0]  %s4931_s1, 11200, %s32_s19, [#allocation6], %s4390_s28, %s4390_s28, %s4391_s29  }
  0x14   :  { %s4392_s7 = smov [#allocation2]   ;;  %s4293_s11 = scalar_lea.hbm %s4930_s0, 1536 }
  0x15   :  { %s19_s8 = sshll.u32 %s4392_s7, 4  ;;  %p4294_p8 = scmp.ne.s32.totalorder %s4930_s0, %s4293_s11  ;;  %s20_s8 = int_to_ptr.vmem [resolvable:$true] %s19_s8 }
  0x16   :  { %p4297_p9 = scmp.lt.u32.totalorder %s4293_s11, %s4930_s0 }
  0x18   :  { %p4299_p10 = pnand %p4297_p9, %p4294_p8 }
  0x1a   :  { %4302 = shalt.err (!%p4299_p10)
}
  0x1b   :  { %s4303_s16 = scalar_lea.vmem %s20_s8, 1536  ;;  %p4308_p12 = scmp.lt.s32.totalorder %s20_s8, %s20_s8 }
  0x1c   :  { %p4304_p11 = scmp.ne.s32.totalorder %s20_s8, %s4303_s16  ;;  %p4309_p13 = scmp.lt.s32.totalorder %s4303_s16, %s4303_s16 }
  0x1e   :  { %p4310_p0 = por %p4309_p13, %p4308_p12 }
  0x20   :  { %p4311_p1 = pnand %p4310_p0, %p4304_p11 }
  0x22   :  { %4314 = shalt.err (!%p4311_p1)
}
  0x23   :  { %s4393_s1 = smov 192   ;;  %s4394_s17 = smov 12  }
  0x24   :  { %25 = dma.hbm_to_vmem [thread:$0]  %s4930_s0, 1536, %s20_s8, [#allocation3], %s4393_s1, %s4393_s1, %s4394_s17  }
  0x25   :  { %s4395_s20 = smov [#allocation7]   ;;  %s4396_s22 = smov [#allocation8]  }
  0x26   :  { %s43_s21 = sshll.u32 %s4395_s20, 4  ;;  %s57_s23 = sshll.u32 %s4396_s22, 4  ;;  %s44_s21 = int_to_ptr.vmem [resolvable:$true] %s43_s21  ;;  %s4461_s23 = int_to_ptr.vmem [resolvable:$true] %s57_s23 }
  0x27   :  { %s4315_s26 = scalar_lea.hbm %s4932_s2, 11200 }
  0x28   :  { %p4316_p2 = scmp.ne.s32.totalorder %s4932_s2, %s4315_s26  ;;  %p4319_p3 = scmp.lt.u32.totalorder %s4315_s26, %s4932_s2 }
  0x2a   :  { %p4321_p4 = pnand %p4319_p3, %p4316_p2 }
  0x2c   :  { %4324 = shalt.err (!%p4321_p4)
}
  0x2d   :  { %s4325_s0 = scalar_lea.vmem %s44_s21, 11200  ;;  %p4330_p6 = scmp.lt.s32.totalorder %s44_s21, %s44_s21 }
  0x2e   :  { %p4326_p5 = scmp.ne.s32.totalorder %s44_s21, %s4325_s0  ;;  %p4331_p7 = scmp.lt.s32.totalorder %s4325_s0, %s4325_s0 }
  0x30   :  { %p4332_p8 = por %p4331_p7, %p4330_p6 }
  0x32   :  { %p4333_p9 = pnand %p4332_p8, %p4326_p5 }
  0x34   :  { %4336 = shalt.err (!%p4333_p9)
}
  0x35   :  { %49 = dma.hbm_to_vmem [thread:$0]  %s4932_s2, 11200, %s44_s21, [#allocation6], %s4390_s28, %s4390_s28, %s4391_s29  }
  0x36   :  { %s4337_s12 = scalar_lea.hbm %s4934_s4, 4416 }
  0x37   :  { %p4338_p10 = scmp.ne.s32.totalorder %s4934_s4, %s4337_s12  ;;  %p4341_p11 = scmp.lt.u32.totalorder %s4337_s12, %s4934_s4 }
  0x39   :  { %p4343_p12 = pnand %p4341_p11, %p4338_p10 }
  0x3b   :  { %4346 = shalt.err (!%p4343_p12)
}
  0x3c   :  { %s4347_s1 = scalar_lea.vmem %s4461_s23, 4416  ;;  %p4352_p0 = scmp.lt.s32.totalorder %s4461_s23, %s4461_s23 }
  0x3d   :  { %p4348_p13 = scmp.ne.s32.totalorder %s4461_s23, %s4347_s1  ;;  %p4353_p1 = scmp.lt.s32.totalorder %s4347_s1, %s4347_s1 }
  0x3f   :  { %p4354_p2 = por %p4353_p1, %p4352_p0 }
  0x41   :  { %p4355_p3 = pnand %p4354_p2, %p4348_p13 }
  0x43   :  { %4358 = shalt.err (!%p4355_p3)
}
  0x44   :  { %s4397_s2 = smov 64   ;;  %s4398_s28 = smov 4  }
  0x45   :  { %63 = dma.hbm_to_vmem [thread:$0]  %s4934_s4, 4416, %s4461_s23, [#allocation9], %s4397_s2, %s4397_s2, %s4398_s28  }
  0x46   :  { %4381 = dma.done.wait [#allocation3], 1536  }
  0x47   :  { %4382 = vsyncadd [#allocation3], 4294965760 }
  0x48   :  { %4383 = dma.done.wait [#allocation6], 22400  }
  0x49   :  { %4384 = vsyncadd [#allocation6], 4294944896 }
  0x4a   :  { %4385 = dma.done.wait [#allocation9], 4416  }
  0x4b   :  { %4386 = vsyncadd [#allocation9], 4294962880  ;;  %v3944_v0 = vld [vmem:[#allocation5 + $0x4] ss:$20 sps:$4 sm:$0xff]   ;;  %v3946_v1 = vld [vmem:[#allocation5 + $0xc] ss:$20 sps:$4 sm:$0xff]  }
  0x4c   :  { %1166 = vmatprep.subr.bf16.mxu0 %v3944_v0  ;;  %v3948_v2 = vld [vmem:[#allocation5] ss:$20 sps:$4 sm:$0xff]   ;;  %v3949_v3 = vld [vmem:[#allocation5 + $0x8] ss:$20 sps:$4 sm:$0xff]   ;;  %1248 = vmatprep.subr.bf16.mxu1 %v3946_v1  ;;  %v3955_v7 = vld [vmem:[#allocation5 + $0x30] ss:$20 sps:$4 sm:$0xff]  }
  0x4d   :  { %v3950_v4 = vld [vmem:[#allocation5 + $0x2c] ss:$20 sps:$4 sm:$0xff]   ;;  %1167 = vmatpush1.bf16.msra.mxu0 %v3948_v2  ;;  %1249 = vmatpush1.bf16.msra.mxu1 %v3949_v3  ;;  %v3952_v5 = vld [vmem:[#allocation5 + $0x34] ss:$20 sps:$4 sm:$0xff]   ;;  %v3958_v9 = vld [vmem:[#allocation5 + $0x5c] ss:$20 sps:$4 sm:$0xff]  }
  0x4e   :  { %v3954_v6 = vld [vmem:[#allocation5 + $0x28] ss:$20 sps:$4 sm:$0xff]   ;;  %1168 = vmatprep.subr.bf16.mxu0 %v3950_v4  ;;  %1250 = vmatprep.subr.bf16.mxu1 %v3952_v5  ;;  %v3960_v10 = vld [vmem:[#allocation5 + $0x50] ss:$20 sps:$4 sm:$0xff]   ;;  %v3961_v11 = vld [vmem:[#allocation5 + $0x58] ss:$20 sps:$4 sm:$0xff]  }
  0x4f   :  { %v3956_v8 = vld [vmem:[#allocation5 + $0x54] ss:$20 sps:$4 sm:$0xff]   ;;  %v3962_v12 = vld [vmem:[#allocation5 + $0x7c] ss:$20 sps:$4 sm:$0xff]   ;;  %v3964_v13 = vld [vmem:[#allocation5 + $0x84] ss:$20 sps:$4 sm:$0xff]  }
  0x50   :  { %v3966_v14 = vld [vmem:[#allocation5 + $0x78] ss:$20 sps:$4 sm:$0xff]   ;;  %v3967_v15 = vld [vmem:[#allocation5 + $0x80] ss:$20 sps:$4 sm:$0xff]   ;;  %v3973_v19 = vld [vmem:[#allocation5 + $0xa8] ss:$20 sps:$4 sm:$0xff]  }
  0x51   :  { %1169 = vmatpush1.bf16.msra.mxu0 %v3954_v6  ;;  %1251 = vmatpush1.bf16.msra.mxu1 %v3955_v7  ;;  %v3968_v16 = vld [vmem:[#allocation5 + $0xa4] ss:$20 sps:$4 sm:$0xff]   ;;  %v3970_v17 = vld [vmem:[#allocation5 + $0xac] ss:$20 sps:$4 sm:$0xff]   ;;  %v3976_v21 = vld [vmem:[#allocation5 + $0xd4] ss:$20 sps:$4 sm:$0xff]  }
  0x52   :  { %1170 = vmatprep.subr.bf16.mxu0 %v3956_v8  ;;  %1252 = vmatprep.subr.bf16.mxu1 %v3958_v9  ;;  %v3972_v18 = vld [vmem:[#allocation5 + $0xa0] ss:$20 sps:$4 sm:$0xff]   ;;  %v3978_v22 = vld [vmem:[#allocation5 + $0xc8] ss:$20 sps:$4 sm:$0xff]   ;;  %v3979_v23 = vld [vmem:[#allocation5 + $0xd0] ss:$20 sps:$4 sm:$0xff]  }
  0x53   :  { %v3974_v20 = vld [vmem:[#allocation5 + $0xcc] ss:$20 sps:$4 sm:$0xff]   ;;  %v3980_v24 = vld [vmem:[#allocation5 + $0xf4] ss:$20 sps:$4 sm:$0xff]   ;;  %v3982_v25 = vld [vmem:[#allocation5 + $0xfc] ss:$20 sps:$4 sm:$0xff]  }
  0x54   :  { %v3984_v26 = vld [vmem:[#allocation5 + $0xf0] ss:$20 sps:$4 sm:$0xff]   ;;  %v3985_v27 = vld [vmem:[#allocation5 + $0xf8] ss:$20 sps:$4 sm:$0xff]   ;;  %v3991_v31 = vld [vmem:[#allocation5 + $0x120] ss:$20 sps:$4 sm:$0xff]  }
  0x55   :  { %1171 = vmatpush1.bf16.msra.mxu0 %v3960_v10  ;;  %1253 = vmatpush1.bf16.msra.mxu1 %v3961_v11  ;;  %v3986_v28 = vld [vmem:[#allocation5 + $0x11c] ss:$20 sps:$4 sm:$0xff]   ;;  %v3988_v29 = vld [vmem:[#allocation5 + $0x124] ss:$20 sps:$4 sm:$0xff]   ;;  %v3994_v33 = vld [vmem:[#allocation5 + $0x14c] ss:$20 sps:$4 sm:$0xff]  }
  0x56   :  { %1172 = vmatprep.subr.bf16.mxu0 %v3962_v12  ;;  %1254 = vmatprep.subr.bf16.mxu1 %v3964_v13  ;;  %v3990_v30 = vld [vmem:[#allocation5 + $0x118] ss:$20 sps:$4 sm:$0xff]   ;;  %v3996_v34 = vld [vmem:[#allocation5 + $0x140] ss:$20 sps:$4 sm:$0xff]   ;;  %v3997_v35 = vld [vmem:[#allocation5 + $0x148] ss:$20 sps:$4 sm:$0xff]  }
  0x57   :  { %v3992_v32 = vld [vmem:[#allocation5 + $0x144] ss:$20 sps:$4 sm:$0xff]   ;;  %v3998_v36 = vld [vmem:[#allocation5 + $0x16c] ss:$20 sps:$4 sm:$0xff]   ;;  %v4000_v37 = vld [vmem:[#allocation5 + $0x174] ss:$20 sps:$4 sm:$0xff]  }
  0x58   :  { %v4002_v38 = vld [vmem:[#allocation5 + $0x168] ss:$20 sps:$4 sm:$0xff]   ;;  %v4003_v39 = vld [vmem:[#allocation5 + $0x170] ss:$20 sps:$4 sm:$0xff]   ;;  %v4009_v43 = vld [vmem:[#allocation5 + $0x198] ss:$20 sps:$4 sm:$0xff]  }
  0x59   :  { %1173 = vmatpush1.bf16.msra.mxu0 %v3966_v14  ;;  %1255 = vmatpush1.bf16.msra.mxu1 %v3967_v15  ;;  %v4004_v40 = vld [vmem:[#allocation5 + $0x194] ss:$20 sps:$4 sm:$0xff]   ;;  %v4006_v41 = vld [vmem:[#allocation5 + $0x19c] ss:$20 sps:$4 sm:$0xff]   ;;  %v4012_v45 = vld [vmem:[#allocation5 + $0x1c4] ss:$20 sps:$4 sm:$0xff]  }
  0x5a   :  { %1174 = vmatprep.subr.bf16.mxu0 %v3968_v16  ;;  %1256 = vmatprep.subr.bf16.mxu1 %v3970_v17  ;;  %v4008_v42 = vld [vmem:[#allocation5 + $0x190] ss:$20 sps:$4 sm:$0xff]   ;;  %vm1148_vm0 = vcmask 1040384   ;;  %v4014_v46 = vld [vmem:[#allocation5 + $0x1b8] ss:$20 sps:$4 sm:$0xff]   ;;  %vm161_vm1 = vcmask 1043456  }
  0x5b   :  { %v4010_v44 = vld [vmem:[#allocation5 + $0x1bc] ss:$20 sps:$4 sm:$0xff]   ;;  %v4015_v47 = vld [vmem:[#allocation5 + $0x1c0] ss:$20 sps:$4 sm:$0xff]   ;;  %v4016_v49 = vld [vmem:[#allocation5 + $0x1e4] ss:$20 sps:$4 sm:$0xff]  }
  0x5c   :  { %v4495_v48 = vld [vmem:[#allocation2] sm:$0xff]  ;;  %v4497_v51 = vld [vmem:[#allocation2 + $0xc] sm:$0xff]  ;;  %v4499_v52 = vld [vmem:[#allocation2 + $0x18] sm:$0xff]  ;;  %v4399_v62 = vmov 0   ;;  %vm656_vm2 = vcmask 1041409   ;;  %vm658_vm3 = vcmask 1042434  }
  0x5d   :  { %1175 = vmatpush1.bf16.msra.mxu0 %v3972_v18  ;;  %1257 = vmatpush1.bf16.msra.mxu1 %v3973_v19  ;;  %v4018_v50 = vld [vmem:[#allocation5 + $0x1ec] ss:$20 sps:$4 sm:$0xff]   ;;  %v4501_v53 = vld [vmem:[#allocation2 + $0x24] sm:$0xff]  ;;  %v3391_v54 = vcombine.high %v4495_v48, %v4495_v48  ;;  %v3390_v55 = vcombine.low %v4495_v48, %v4495_v48  ;;  %v4507_v56 = vld [vmem:[#allocation2 + $0x30] sm:$0xff]  ;;  %v3394_v59 = vcombine.high %v4497_v51, %v4497_v51  ;;  %v4521_v63 = vsel %vm1148_vm0, 65535, %v4399_v62 }
  0x5e   :  { %1176 = vmatprep.subr.bf16.mxu0 %v3974_v20  ;;  %1258 = vmatprep.subr.bf16.mxu1 %v3976_v21  ;;  %v4509_v57 = vld [vmem:[#allocation2 + $0x3c] sm:$0xff]  ;;  %v4511_v58 = vld [vmem:[#allocation2 + $0x48] sm:$0xff]  ;;  %v3397_v60 = vcombine.high %v4499_v52, %v4499_v52  ;;  %v3400_v61 = vcombine.high %v4501_v53, %v4501_v53  ;;  %v4523_v0 = vld [vmem:[#allocation2 + $0x54] sm:$0xff]  ;;  %v3403_v1 = vcombine.high %v4507_v56, %v4507_v56  ;;  %vm660_vm4 = vcmask 1043459  }
  0x5f   :  { %v3406_v2 = vcombine.high %v4509_v57, %v4509_v57  ;;  %v3409_v3 = vcombine.high %v4511_v58, %v4511_v58  ;;  %v177_v4 = vsel %vm161_vm1, %v3391_v54, 4286644096  ;;  %v3412_v5 = vcombine.high %v4523_v0, %v4523_v0  ;;  %v4020_v13 = vld [vmem:[#allocation5 + $0x1e0] ss:$20 sps:$4 sm:$0xff]   ;;  %v4021_v14 = vld [vmem:[#allocation5 + $0x1e8] ss:$20 sps:$4 sm:$0xff]  }
  0x60   :  { %v179_v6 = vunpack.i.l.bf16 %v177_v4  ;;  %v180_v7 = vunpack.i.h.bf16 %v177_v4  ;;  %v217_v8 = vsel %vm161_vm1, %v3394_v59, 4286644096  ;;  %v256_v11 = vsel %vm161_vm1, %v3397_v60, 4286644096  ;;  %v4022_v15 = vld [vmem:[#allocation5 + $0x20c] ss:$20 sps:$4 sm:$0xff]  }
  0x61   :  { %1177 = vmatpush1.bf16.msra.mxu0 %v3978_v22  ;;  %1259 = vmatpush1.bf16.msra.mxu1 %v3979_v23  ;;  %v219_v9 = vunpack.i.l.bf16 %v217_v8  ;;  %v220_v10 = vunpack.i.h.bf16 %v217_v8  ;;  %v295_v12 = vsel %vm161_vm1, %v3400_v61, 4286644096  ;;  %v258_v17 = vunpack.i.l.bf16 %v256_v11  ;;  %v4024_v20 = vld [vmem:[#allocation5 + $0x214] ss:$20 sps:$4 sm:$0xff]   ;;  %v4033_v54 = vld [vmem:[#allocation5 + $0x238] ss:$20 sps:$4 sm:$0xff]  }
  0x62   :  { %1178 = vmatprep.subr.bf16.mxu0 %v3980_v24  ;;  %1260 = vmatprep.subr.bf16.mxu1 %v3982_v25  ;;  %v181_v16 = vmax.f32 %v179_v6, %v180_v7  ;;  %v259_v18 = vunpack.i.h.bf16 %v256_v11  ;;  %v297_v19 = vunpack.i.l.bf16 %v295_v12  ;;  %v298_v22 = vunpack.i.h.bf16 %v295_v12  ;;  %v4036_v8 = vld [vmem:[#allocation5 + $0x264] ss:$20 sps:$4 sm:$0xff]  }
  0x63   :  { %v221_v21 = vmax.f32 %v219_v9, %v220_v10  ;;  %v334_v23 = vsel %vm161_vm1, %v3403_v1, 4286644096  ;;  %v373_v24 = vsel %vm161_vm1, %v3406_v2, 4286644096  ;;  %v451_v1 = vsel %vm161_vm1, %v3412_v5, 4286644096 }
  0x64   :  { %v182_v25 = vrot.slane %v181_v16, 4  ;;  %v4034_v2 = vld [vmem:[#allocation5 + $0x25c] ss:$20 sps:$4 sm:$0xff]   ;;  %v453_v12 = vunpack.i.l.bf16 %v451_v1  ;;  %vm662_vm5 = vcmask 1044484   ;;  %vm664_vm6 = vcmask 1045509  }
  0x65   :  { %1179 = vmatpush1.bf16.msra.mxu0 %v3984_v26  ;;  %1261 = vmatpush1.bf16.msra.mxu1 %v3985_v27  ;;  %v260_v26 = vmax.f32 %v258_v17, %v259_v18  ;;  %v336_v27 = vunpack.i.l.bf16 %v334_v23  ;;  %vm666_vm7 = vcmask 1046534   ;;  %vm668_vm8 = vcmask 1047559  }
  0x66   :  { %1180 = vmatprep.subr.bf16.mxu0 %v3986_v28  ;;  %1262 = vmatprep.subr.bf16.mxu1 %v3988_v29  ;;  %v337_v28 = vunpack.i.h.bf16 %v334_v23  ;;  %v4026_v29 = vld [vmem:[#allocation5 + $0x208] ss:$20 sps:$4 sm:$0xff]   ;;  %vm189_vm9 = vcmask 134144   ;;  %vm1144_vm10 = vcmask 138240   ;;  %vm4401_vm11 = vmmov 0  }
  0x67   :  { %vm3097_vm12 = vcmask 277504  }
  0x69   :  { %1181 = vmatpush1.bf16.msra.mxu0 %v3990_v30  ;;  %1263 = vmatpush1.bf16.msra.mxu1 %v3991_v31  ;;  %v222_v30 = vrot.slane %v221_v21, 4  ;;  %v299_v31 = vmax.f32 %v297_v19, %v298_v22  ;;  %v4058_v22 = vld [vmem:[#allocation5 + $0x284] ss:$20 sps:$4 sm:$0xff]  }
  0x6a   :  { %1182 = vmatprep.subr.bf16.mxu0 %v3992_v32  ;;  %1264 = vmatprep.subr.bf16.mxu1 %v3994_v33  ;;  %v375_v32 = vunpack.i.l.bf16 %v373_v24  ;;  %v376_v33 = vunpack.i.h.bf16 %v373_v24 }
  0x6d   :  { %1183 = vmatpush1.bf16.msra.mxu0 %v3996_v34  ;;  %1265 = vmatpush1.bf16.msra.mxu1 %v3997_v35  ;;  %v4027_v34 = vld [vmem:[#allocation5 + $0x210] ss:$20 sps:$4 sm:$0xff]   ;;  %v183_v35 = vmax.f32 %v181_v16, %v182_v25 }
  0x6e   :  { %1184 = vmatprep.subr.bf16.mxu0 %v3998_v36  ;;  %1266 = vmatprep.subr.bf16.mxu1 %v4000_v37  ;;  %v261_v36 = vrot.slane %v260_v26, 4  ;;  %v338_v37 = vmax.f32 %v336_v27, %v337_v28 }
  0x71   :  { %1185 = vmatpush1.bf16.msra.mxu0 %v4002_v38  ;;  %1267 = vmatpush1.bf16.msra.mxu1 %v4003_v39  ;;  %v412_v38 = vsel %vm161_vm1, %v3409_v3, 4286644096  ;;  %v4028_v39 = vld [vmem:[#allocation5 + $0x234] ss:$20 sps:$4 sm:$0xff]  }
  0x72   :  { %1186 = vmatprep.subr.bf16.mxu0 %v4004_v40  ;;  %1268 = vmatprep.subr.bf16.mxu1 %v4006_v41  ;;  %v4030_v40 = vld [vmem:[#allocation5 + $0x23c] ss:$20 sps:$4 sm:$0xff]   ;;  %v223_v41 = vmax.f32 %v221_v21, %v222_v30  ;;  %v454_v21 = vunpack.i.h.bf16 %v451_v1 }
  0x74   :  { %v224_v59 = vrot.slane %v223_v41, 2  ;;  %v455_v30 = vmax.f32 %v453_v12, %v454_v21 }
  0x75   :  { %1187 = vmatpush1.bf16.msra.mxu0 %v4008_v42  ;;  %1269 = vmatpush1.bf16.msra.mxu1 %v4009_v43  ;;  %v300_v42 = vrot.slane %v299_v31, 4  ;;  %v377_v43 = vmax.f32 %v375_v32, %v376_v33 }
  0x76   :  { %1188 = vmatprep.subr.bf16.mxu0 %v4010_v44  ;;  %1270 = vmatprep.subr.bf16.mxu1 %v4012_v45  ;;  %v414_v44 = vunpack.i.l.bf16 %v412_v38  ;;  %v4032_v45 = vld [vmem:[#allocation5 + $0x230] ss:$20 sps:$4 sm:$0xff]   ;;  %v225_v9 = vmax.f32 %v223_v41, %v224_v59  ;;  %v3393_v59 = vcombine.low %v4497_v51, %v4497_v51  ;;  %v3399_v51 = vcombine.low %v4501_v53, %v4501_v53 }
  0x77   :  { %v301_v60 = vmax.f32 %v299_v31, %v300_v42  ;;  %v378_v61 = vrot.slane %v377_v43, 4  ;;  %v4061_v31 = vld [vmem:[#allocation5 + $0x28c] ss:$20 sps:$4 sm:$0xff]   ;;  %v164_v53 = vsel %vm161_vm1, %v3390_v55, 4286644096 }
  0x78   :  { %v226_v18 = vrot.slane %v225_v9, 1 }
  0x79   :  { %1189 = vmatpush1.bf16.msra.mxu0 %v4014_v46  ;;  %1271 = vmatpush1.bf16.msra.mxu1 %v4015_v47  ;;  %v184_v46 = vrot.slane %v183_v35, 2  ;;  %v262_v47 = vmax.f32 %v260_v26, %v261_v36  ;;  %v302_v10 = vrot.slane %v301_v60, 2  ;;  %v379_v11 = vmax.f32 %v377_v43, %v378_v61 }
  0x7a   :  { %1190 = vmatprep.subr.bf16.mxu0 %v4016_v49  ;;  %1272 = vmatprep.subr.bf16.mxu1 %v4018_v50  ;;  %v339_v49 = vrot.slane %v338_v37, 4  ;;  %v415_v50 = vunpack.i.h.bf16 %v412_v38  ;;  %v227_v27 = vmax.f32 %v225_v9, %v226_v18 }
  0x7b   :  { %v185_v3 = vmax.f32 %v183_v35, %v184_v46  ;;  %v263_v4 = vrot.slane %v262_v47, 2  ;;  %v303_v19 = vmax.f32 %v301_v60, %v302_v10 }
  0x7c   :  { %v340_v6 = vmax.f32 %v338_v37, %v339_v49  ;;  %v416_v7 = vmax.f32 %v414_v44, %v415_v50  ;;  %v228_v36 = vpack.i.bf16 %v227_v27, %v227_v27 }
  0x7d   :  { %1191 = vmatpush1.bf16.msra.mxu0 %v4020_v13  ;;  %1273 = vmatpush1.bf16.msra.mxu1 %v4021_v14  ;;  %v4038_v13 = vld [vmem:[#allocation5 + $0x258] ss:$20 sps:$4 sm:$0xff]   ;;  %v4039_v14 = vld [vmem:[#allocation5 + $0x260] ss:$20 sps:$4 sm:$0xff]   ;;  %v264_v5 = vmax.f32 %v262_v47, %v263_v4  ;;  %v304_v28 = vrot.slane %v303_v19, 1 }
  0x7e   :  { %1192 = vmatprep.subr.bf16.mxu0 %v4022_v15  ;;  %1274 = vmatprep.subr.bf16.mxu1 %v4024_v20  ;;  %v186_v15 = vrot.slane %v185_v3, 1  ;;  %v341_v16 = vrot.slane %v340_v6, 2  ;;  %v417_v17 = vrot.slane %v416_v7, 4  ;;  %v380_v20 = vrot.slane %v379_v11, 2 }
  0x7f   :  { %v265_v24 = vrot.slane %v264_v5, 1  ;;  %v305_v37 = vmax.f32 %v303_v19, %v304_v28  ;;  %v636_v47 = vunpack.c.l.b16 %v228_v36  ;;  %v166_v19 = vunpack.i.l.bf16 %v164_v53 }
  0x80   :  { %v187_v23 = vmax.f32 %v185_v3, %v186_v15  ;;  %v342_v25 = vmax.f32 %v340_v6, %v341_v16  ;;  %v418_v26 = vmax.f32 %v416_v7, %v417_v17  ;;  %v3396_v7 = vcombine.low %v4499_v52, %v4499_v52 }
  0x81   :  { %1193 = vmatpush1.bf16.msra.mxu0 %v4026_v29  ;;  %1275 = vmatpush1.bf16.msra.mxu1 %v4027_v34  ;;  %v381_v29 = vmax.f32 %v379_v11, %v380_v20  ;;  %v266_v33 = vmax.f32 %v264_v5, %v265_v24  ;;  %v306_v44 = vpack.i.bf16 %v305_v37, %v305_v37  ;;  %v167_v20 = vunpack.i.h.bf16 %v164_v53 }
  0x82   :  { %1194 = vmatprep.subr.bf16.mxu0 %v4028_v39  ;;  %1276 = vmatprep.subr.bf16.mxu1 %v4030_v40  ;;  %v188_v32 = vpack.i.bf16 %v187_v23, %v187_v23  ;;  %v343_v34 = vrot.slane %v342_v25, 1  ;;  %v419_v35 = vrot.slane %v418_v26, 2  ;;  %v456_v39 = vrot.slane %v455_v30, 4 }
  0x83   :  { %v382_v38 = vrot.slane %v381_v29, 1  ;;  %v267_v40 = vpack.i.bf16 %v266_v33, %v266_v33  ;;  %v642_v1 = vunpack.c.l.b16 %v306_v44  ;;  %v3408_v52 = vcombine.low %v4511_v58, %v4511_v58 }
  0x84   :  { %v344_v41 = vmax.f32 %v342_v25, %v343_v34  ;;  %v420_v42 = vmax.f32 %v418_v26, %v419_v35  ;;  %v633_v43 = vunpack.c.l.b16 %v188_v32  ;;  %v457_v46 = vmax.f32 %v455_v30, %v456_v39 }
  0x85   :  { %1195 = vmatpush1.bf16.msra.mxu0 %v4032_v45  ;;  %1277 = vmatpush1.bf16.msra.mxu1 %v4033_v54  ;;  %v383_v45 = vmax.f32 %v381_v29, %v382_v38  ;;  %v639_v54 = vunpack.c.l.b16 %v267_v40  ;;  %v3411_v16 = vcombine.low %v4523_v0, %v4523_v0  ;;  %v243_v18 = vsel %vm161_vm1, %v3396_v7, 4286644096 }
  0x86   :  { %1196 = vmatprep.subr.bf16.mxu0 %v4034_v2  ;;  %1278 = vmatprep.subr.bf16.mxu1 %v4036_v8  ;;  %v345_v49 = vpack.i.bf16 %v344_v41, %v344_v41  ;;  %v421_v50 = vrot.slane %v420_v42, 1  ;;  %v458_v61 = vrot.slane %v457_v46, 2  ;;  %v670_v2 = vsel %vm656_vm2, %v636_v47, %v633_v43 }
  0x87   :  { %v384_v60 = vpack.i.bf16 %v383_v45, %v383_v45  ;;  %v671_v6 = vsel %vm658_vm3, %v639_v54, %v670_v2  ;;  %v245_v23 = vunpack.i.l.bf16 %v243_v18  ;;  %v246_v24 = vunpack.i.h.bf16 %v243_v18 }
  0x88   :  { %v422_v3 = vmax.f32 %v420_v42, %v421_v50  ;;  %v645_v4 = vunpack.c.l.b16 %v345_v49  ;;  %v459_v8 = vmax.f32 %v457_v46, %v458_v61  ;;  %v672_v10 = vsel %vm660_vm4, %v642_v1, %v671_v6 }
  0x89   :  { %1197 = vmatpush1.bf16.msra.mxu0 %v4038_v13  ;;  %1279 = vmatpush1.bf16.msra.mxu1 %v4039_v14  ;;  %v648_v9 = vunpack.c.l.b16 %v384_v60  ;;  %v3402_v13 = vcombine.low %v4507_v56, %v4507_v56  ;;  %v3405_v14 = vcombine.low %v4509_v57, %v4509_v57  ;;  %v204_v56 = vsel %vm161_vm1, %v3393_v59, 4286644096 }
  0x8a   :  { %1207 = vmatprep.subr.bf16.mxu0 %v4058_v22  ;;  %1289 = vmatprep.subr.bf16.mxu1 %v4061_v31  ;;  %v423_v11 = vpack.i.bf16 %v422_v3, %v422_v3  ;;  %v673_v12 = vsel %vm662_vm5, %v645_v4, %v672_v10  ;;  %v460_v15 = vrot.slane %v459_v8, 1  ;;  %v206_v21 = vunpack.i.l.bf16 %v204_v56 }
  0x8b   :  { %v674_v5 = vsel %vm664_vm6, %v648_v9, %v673_v12  ;;  %v207_v58 = vunpack.i.h.bf16 %v204_v56  ;;  %v168_v25 = vmax.f32 %v166_v19, %v167_v20  ;;  %v282_v26 = vsel %vm161_vm1, %v3399_v51, 4286644096 }
  0x8c   :  { %v651_v17 = vunpack.c.l.b16 %v423_v11  ;;  %v461_v57 = vmax.f32 %v459_v8, %v460_v15  ;;  %v321_v48 = vsel %vm161_vm1, %v3402_v13, 4286644096  ;;  %v247_v27 = vmax.f32 %v245_v23, %v246_v24 }
  0x8d   :  { %v208_v55 = vmax.f32 %v206_v21, %v207_v58  ;;  %v284_v28 = vunpack.i.l.bf16 %v282_v26  ;;  %v285_v29 = vunpack.i.h.bf16 %v282_v26  ;;  %v169_v31 = vrot.slane %v168_v25, 4  ;;  %v578_v26 = vld [vmem:[#allocation5 + $0x2a8] sm:$0x11] }
  0x8e   :  { %v675_v22 = vsel %vm666_vm7, %v651_v17, %v674_v5  ;;  %v462_v0 = vpack.i.bf16 %v461_v57, %v461_v57  ;;  %v323_v32 = vunpack.i.l.bf16 %v321_v48  ;;  %v324_v33 = vunpack.i.h.bf16 %v321_v48 }
  0x8f   :  { %v209_v34 = vrot.slane %v208_v55, 4  ;;  %v248_v35 = vrot.slane %v247_v27, 4  ;;  %v286_v36 = vmax.f32 %v284_v28, %v285_v29  ;;  %v360_v37 = vsel %vm161_vm1, %v3405_v14, 4286644096 }
  0x90   :  { %v654_v30 = vunpack.c.l.b16 %v462_v0  ;;  %v170_v39 = vmax.f32 %v168_v25, %v169_v31  ;;  %v325_v40 = vmax.f32 %v323_v32, %v324_v33  ;;  %v362_v41 = vunpack.i.l.bf16 %v360_v37 }
  0x91   :  { %v210_v43 = vmax.f32 %v208_v55, %v209_v34  ;;  %v249_v44 = vmax.f32 %v247_v27, %v248_v35  ;;  %v287_v45 = vrot.slane %v286_v36, 4  ;;  %v363_v49 = vunpack.i.h.bf16 %v360_v37 }
  0x92   :  { %v676_v38 = vsel %vm668_vm8, %v654_v30, %v675_v22  ;;  %v171_v46 = vrot.slane %v170_v39, 2  ;;  %v326_v47 = vrot.slane %v325_v40, 4  ;;  %v399_v50 = vsel %vm161_vm1, %v3408_v52, 4286644096 }
  0x93   :  { %v4571_v42 = vpack.c.b16 %v676_v38, %v676_v38  ;;  %v211_v54 = vrot.slane %v210_v43, 2  ;;  %v250_v59 = vrot.slane %v249_v44, 2  ;;  %v288_v60 = vmax.f32 %v286_v36, %v287_v45 }
  0x94   :  { %v401_v61 = vunpack.i.l.bf16 %v399_v50  ;;  %v172_v1 = vmax.f32 %v170_v39, %v171_v46  ;;  %v327_v2 = vmax.f32 %v325_v40, %v326_v47  ;;  %v364_v3 = vmax.f32 %v362_v41, %v363_v49  ;;  %v579_v41 = vld [vmem:[#allocation5 + $0x2b0] sm:$0x11] }
  0x95   :  { %1198 = vmatprep.mubr.bf16.mxu0 %v4571_v42  ;;  %1280 = vmatprep.mubr.bf16.mxu1 %v4571_v42  ;;  %v402_v4 = vunpack.i.h.bf16 %v399_v50  ;;  %v212_v6 = vmax.f32 %v210_v43, %v211_v54  ;;  %v251_v7 = vmax.f32 %v249_v44, %v250_v59  ;;  %v289_v8 = vrot.slane %v288_v60, 2  ;;  %v4578_v43 = vld [vmem:[#allocation2 + $0x8] sm:$0xf]  ;;  %v4581_v49 = vld [vmem:[#allocation2 + $0x14] sm:$0xf] }
  0x96   :  { %v438_v9 = vsel %vm161_vm1, %v3411_v16, 4286644096  ;;  %v173_v10 = vrot.slane %v172_v1, 1  ;;  %v328_v51 = vrot.slane %v327_v2, 2  ;;  %v365_v11 = vrot.slane %v364_v3, 4 }
  0x97   :  { %v403_v12 = vmax.f32 %v401_v61, %v402_v4  ;;  %v213_v13 = vrot.slane %v212_v6, 1  ;;  %v252_v14 = vrot.slane %v251_v7, 1  ;;  %v290_v15 = vmax.f32 %v288_v60, %v289_v8  ;;  %v4590_v61 = vld [vmem:[#allocation2 + $0x20] sm:$0xf] }
  0x98   :  { %v440_v5 = vunpack.i.l.bf16 %v438_v9  ;;  %v174_v52 = vmax.f32 %v172_v1, %v173_v10  ;;  %v329_v17 = vmax.f32 %v327_v2, %v328_v51  ;;  %v366_v53 = vmax.f32 %v364_v3, %v365_v11  ;;  %v4597_v10 = vld [vmem:[#allocation2 + $0x44] sm:$0xf]  ;;  %v4599_v51 = vld [vmem:[#allocation2 + $0x50] sm:$0xf] }
  0x99   :  { %v404_v56 = vrot.slane %v403_v12, 4  ;;  %v214_v18 = vmax.f32 %v212_v6, %v213_v13  ;;  %v253_v57 = vmax.f32 %v251_v7, %v252_v14  ;;  %v291_v19 = vrot.slane %v290_v15, 1  ;;  %v4593_v6 = vld [vmem:[#allocation2 + $0x2c] sm:$0xf]  ;;  %v4595_v7 = vld [vmem:[#allocation2 + $0x38] sm:$0xf] }
  0x9a   :  { %v441_v20 = vunpack.i.h.bf16 %v438_v9  ;;  %v175_v21 = vpack.i.bf16 %v174_v52, %v174_v52  ;;  %v330_v22 = vrot.slane %v329_v17, 1  ;;  %v367_v58 = vrot.slane %v366_v53, 2 }
  0x9b   :  { %v405_v16 = vmax.f32 %v403_v12, %v404_v56  ;;  %v215_v23 = vpack.i.bf16 %v214_v18, %v214_v18  ;;  %v254_v24 = vpack.i.bf16 %v253_v57, %v253_v57  ;;  %v292_v0 = vmax.f32 %v290_v15, %v291_v19 }
  0x9c   :  { %v442_v25 = vmax.f32 %v440_v5, %v441_v20  ;;  %v331_v48 = vmax.f32 %v329_v17, %v330_v22  ;;  %v368_v55 = vmax.f32 %v366_v53, %v367_v58  ;;  %v632_v28 = vunpack.c.l.b16 %v175_v21  ;;  %v4608_v5 = vld [vmem:[#allocation2 + $0x5c] sm:$0xf] }
  0x9d   :  { %v406_v27 = vrot.slane %v405_v16, 2  ;;  %v293_v29 = vpack.i.bf16 %v292_v0, %v292_v0  ;;  %v635_v31 = vunpack.c.l.b16 %v215_v23  ;;  %v638_v32 = vunpack.c.l.b16 %v254_v24 }
  0x9e   :  { %v443_v30 = vrot.slane %v442_v25, 4  ;;  %v332_v33 = vpack.i.bf16 %v331_v48, %v331_v48  ;;  %v369_v34 = vrot.slane %v368_v55, 1  ;;  %v3499_v36 = vcombine.low %v578_v26, %v578_v26 }
  0x9f   :  { %v407_v35 = vmax.f32 %v405_v16, %v406_v27  ;;  %v641_v38 = vunpack.c.l.b16 %v293_v29  ;;  %v657_v39 = vsel %vm656_vm2, %v635_v31, %v632_v28  ;;  %v3500_v40 = vcombine.high %v578_v26, %v578_v26 }
  0xa0   :  { %v444_v37 = vmax.f32 %v442_v25, %v443_v30  ;;  %v370_v44 = vmax.f32 %v368_v55, %v369_v34  ;;  %v644_v46 = vunpack.c.l.b16 %v332_v33  ;;  %v659_v47 = vsel %vm658_vm3, %v638_v32, %v657_v39 }
  0xa1   :  { %v408_v45 = vrot.slane %v407_v35, 1  ;;  %v661_v54 = vsel %vm660_vm4, %v641_v38, %v659_v47  ;;  %v4585_v59 = vand.u32 %v3500_v40, %v4521_v63  ;;  %v4588_v60 = vand.u32 %v3499_v36, %v4521_v63 }
  0xa2   :  { %v445_v50 = vrot.slane %v444_v37, 2  ;;  %v371_v1 = vpack.i.bf16 %v370_v44, %v370_v44  ;;  %v663_v3 = vsel %vm662_vm5, %v644_v46, %v661_v54  ;;  %v3501_v4 = vcombine.low %v579_v41, %v579_v41 }
  0xa3   :  { %v409_v2 = vmax.f32 %v407_v35, %v408_v45  ;;  %v3502_v9 = vcombine.high %v579_v41, %v579_v41  ;;  %v3392_v11 = vcombine.low %v4578_v43, %v4578_v43  ;;  %v3395_v12 = vcombine.low %v4581_v49, %v4581_v49  ;;  %v4059_v45 = vld [vmem:[#allocation5 + $0x288] ss:$20 sps:$4 sm:$0xff]  }
  0xa4   :  { %v446_v8 = vmax.f32 %v444_v37, %v445_v50  ;;  %v647_v14 = vunpack.c.l.b16 %v371_v1  ;;  %v4606_v15 = vand.u32 %v3501_v4, %v4521_v63  ;;  %v3398_v52 = vcombine.low %v4590_v61, %v4590_v61  ;;  %v4056_v37 = vld [vmem:[#allocation5 + $0x280] ss:$20 sps:$4 sm:$0xff]  }
  0xa5   :  { %v410_v13 = vpack.i.bf16 %v409_v2, %v409_v2  ;;  %v1161_v53 = vand.u32 %v3502_v9, %v4521_v63  ;;  %v3401_v56 = vcombine.low %v4593_v6, %v4593_v6  ;;  %v3404_v18 = vcombine.low %v4595_v7, %v4595_v7 }
  0xa6   :  { %v447_v17 = vrot.slane %v446_v8, 1  ;;  %v665_v19 = vsel %vm664_vm6, %v647_v14, %v663_v3  ;;  %v3407_v20 = vcombine.low %v4597_v10, %v4597_v10  ;;  %v3410_v21 = vcombine.low %v4599_v51, %v4599_v51 }
  0xa7   :  { %v650_v57 = vunpack.c.l.b16 %v410_v13  ;;  %v3413_v58 = vcombine.low %v4608_v5, %v4608_v5  ;;  %v191_v16 = vsel %vm189_vm9, %v3392_v11, 4286644096  ;;  %v230_v23 = vsel %vm189_vm9, %v3395_v12, 4286644096 }
  0xa8   :  { %v448_v22 = vmax.f32 %v446_v8, %v447_v17  ;;  %v193_v0 = vunpack.i.l.bf16 %v191_v16  ;;  %v194_v25 = vunpack.i.h.bf16 %v191_v16  ;;  %v232_v26 = vunpack.i.l.bf16 %v230_v23 }
  0xa9   :  { %v667_v24 = vsel %vm666_vm7, %v650_v57, %v665_v19  ;;  %v233_v55 = vunpack.i.h.bf16 %v230_v23  ;;  %v269_v27 = vsel %vm189_vm9, %v3398_v52, 4286644096  ;;  %v308_v28 = vsel %vm189_vm9, %v3401_v56, 4286644096  ;;  %v4066_v19 = vld [vmem:[#allocation5 + $0x150] ss:$20 sps:$4 sm:$0xff]  }
  0xaa   :  { %v449_v48 = vpack.i.bf16 %v448_v22, %v448_v22  ;;  %v195_v29 = vmax.f32 %v193_v0, %v194_v25  ;;  %v271_v30 = vunpack.i.l.bf16 %v269_v27  ;;  %v272_v31 = vunpack.i.h.bf16 %v269_v27 }
  0xab   :  { %v310_v32 = vunpack.i.l.bf16 %v308_v28  ;;  %v234_v34 = vmax.f32 %v232_v26, %v233_v55  ;;  %v311_v35 = vunpack.i.h.bf16 %v308_v28  ;;  %v347_v36 = vsel %vm189_vm9, %v3404_v18, 4286644096 }
  0xac   :  { %v653_v33 = vunpack.c.l.b16 %v449_v48  ;;  %v196_v38 = vrot.slane %v195_v29, 4  ;;  %v273_v39 = vmax.f32 %v271_v30, %v272_v31  ;;  %v349_v40 = vunpack.i.l.bf16 %v347_v36 }
  0xad   :  { %v350_v41 = vunpack.i.h.bf16 %v347_v36  ;;  %v235_v46 = vrot.slane %v234_v34, 4  ;;  %v312_v47 = vmax.f32 %v310_v32, %v311_v35  ;;  %v386_v50 = vsel %vm189_vm9, %v3407_v20, 4286644096 }
  0xae   :  { %v669_v44 = vsel %vm668_vm8, %v653_v33, %v667_v24  ;;  %v197_v1 = vmax.f32 %v195_v29, %v196_v38  ;;  %v274_v2 = vrot.slane %v273_v39, 4  ;;  %v388_v9 = vunpack.i.l.bf16 %v386_v50 }
  0xaf   :  { %v4632_v54 = vpack.c.b16 %v669_v44, %v669_v44  ;;  %v351_v3 = vmax.f32 %v349_v40, %v350_v41  ;;  %v236_v4 = vmax.f32 %v234_v34, %v235_v46  ;;  %v313_v8 = vrot.slane %v312_v47, 4 }
  0xb0   :  { %v389_v11 = vunpack.i.h.bf16 %v386_v50  ;;  %v198_v12 = vrot.slane %v197_v1, 2  ;;  %v275_v13 = vmax.f32 %v273_v39, %v274_v2  ;;  %v425_v52 = vsel %vm189_vm9, %v3410_v21, 4286644096 }
  0xb1   :  { %1199 = vmatmul.mubr.bf16.vlgmr.msra.gmra.mrb[0].mxu0 %v4632_v54  ;;  %1281 = vmatmul.mubr.bf16.vlgmr.msra.gmra.mrb[0].mxu1 %v4632_v54  ;;  %v352_v14 = vrot.slane %v351_v3, 4  ;;  %v237_v17 = vrot.slane %v236_v4, 2  ;;  %v314_v56 = vmax.f32 %v312_v47, %v313_v8  ;;  %v427_v57 = vunpack.i.l.bf16 %v425_v52 }
  0xb2   :  { %1208 = vmatpush1.bf16.msra.mxu0 %v4056_v37  ;;  %1290 = vmatpush1.bf16.msra.mxu1 %v4059_v45  ;;  %v390_v18 = vmax.f32 %v388_v9, %v389_v11  ;;  %v199_v20 = vmax.f32 %v197_v1, %v198_v12  ;;  %v276_v22 = vrot.slane %v275_v13, 2  ;;  %v428_v23 = vunpack.i.h.bf16 %v425_v52 }
  0xb3   :  { %1209 = vmatprep.subr.bf16.mxu0 %v4585_v59  ;;  %1291 = vmatprep.subr.bf16.mxu1 %v1161_v53  ;;  %v353_v16 = vmax.f32 %v351_v3, %v352_v14  ;;  %v238_v24 = vmax.f32 %v236_v4, %v237_v17  ;;  %v315_v21 = vrot.slane %v314_v56, 2  ;;  %v464_v25 = vsel %vm189_vm9, %v3413_v58, 4286644096 }
  0xb4   :  { %1239 = vmatprep.mubr.bf16.mxu0 %v4399_v62  ;;  %1321 = vmatprep.mubr.bf16.mxu1 %v4399_v62  ;;  %v391_v0 = vrot.slane %v390_v18, 4  ;;  %v200_v26 = vrot.slane %v199_v20, 1  ;;  %v277_v48 = vmax.f32 %v275_v13, %v276_v22  ;;  %v429_v27 = vmax.f32 %v427_v57, %v428_v23 }
  0xb5   :  { %v354_v55 = vrot.slane %v353_v16, 2  ;;  %v239_v59 = vrot.slane %v238_v24, 1  ;;  %v316_v53 = vmax.f32 %v314_v56, %v315_v21  ;;  %v466_v29 = vunpack.i.l.bf16 %v464_v25 }
  0xb6   :  { %1210 = vmatpush1.bf16.msra.mxu0 %v4588_v60  ;;  %1292 = vmatpush1.bf16.msra.mxu1 %v4606_v15  ;;  %v392_v28 = vmax.f32 %v390_v18, %v391_v0  ;;  %v4400_v30 = vmov 0.0   ;;  %v201_v31 = vmax.f32 %v199_v20, %v200_v26  ;;  %v278_v32 = vrot.slane %v277_v48, 1 }
  0xb7   :  { %3660 = vmatprep.subr.bf16.mxu0 %v4066_v19  ;;  %3818 = vmatprep.subr.bf16.mxu1 %v4400_v30  ;;  %v355_v33 = vmax.f32 %v353_v16, %v354_v55  ;;  %v430_v58 = vrot.slane %v429_v27, 4  ;;  %v240_v34 = vmax.f32 %v238_v24, %v239_v59  ;;  %v317_v35 = vrot.slane %v316_v53, 1 }
  0xb8   :  { %v393_v36 = vrot.slane %v392_v28, 2  ;;  %v467_v37 = vunpack.i.h.bf16 %v464_v25  ;;  %v202_v38 = vpack.i.bf16 %v201_v31, %v201_v31  ;;  %v279_v60 = vmax.f32 %v277_v48, %v278_v32  ;;  %v4079_v32 = vld [vmem:[#allocation5 + $0x2b8] ss:$0 sps:$4 sm:$0x11]  }
  0xb9   :  { %v356_v39 = vrot.slane %v355_v33, 1  ;;  %v431_v15 = vmax.f32 %v429_v27, %v430_v58  ;;  %v241_v40 = vpack.i.bf16 %v240_v34, %v240_v34  ;;  %v318_v41 = vmax.f32 %v316_v53, %v317_v35  ;;  %v4077_v58 = vld [vmem:[#allocation5 + $0x178] ss:$20 sps:$4 sm:$0xff]   ;;  %v4080_v34 = vld [vmem:[#allocation5 + $0x1a0] ss:$20 sps:$4 sm:$0xff]  }
  0xba   :  { %v394_v44 = vmax.f32 %v392_v28, %v393_v36  ;;  %v468_v45 = vmax.f32 %v466_v29, %v467_v37  ;;  %v280_v46 = vpack.i.bf16 %v279_v60, %v279_v60  ;;  %v634_v1 = vunpack.c.l.b16 %v202_v38  ;;  %v4083_v35 = vld [vmem:[#allocation7 + $0x4] ss:$20 sps:$4 sm:$0xff]   ;;  %v4085_v36 = vld [vmem:[#allocation5 + $0x1c8] ss:$20 sps:$4 sm:$0xff]   ;;  %v4086_v38 = vld [vmem:[#allocation7 + $0x28] ss:$20 sps:$4 sm:$0xff]  }
  0xbb   :  { %v357_v47 = vmax.f32 %v355_v33, %v356_v39  ;;  %v432_v50 = vrot.slane %v431_v15, 2  ;;  %v319_v2 = vpack.i.bf16 %v318_v41, %v318_v41  ;;  %v637_v8 = vunpack.c.l.b16 %v241_v40  ;;  %v4076_v33 = vld [vmem:[#allocation5 + $0x290] ss:$20 sps:$4 sm:$0xff]   ;;  %v4088_v37 = vld [vmem:[#allocation7 + $0x2c] ss:$20 sps:$4 sm:$0xff]  }
  0xbc   :  { %v395_v3 = vrot.slane %v394_v44, 1  ;;  %v469_v4 = vrot.slane %v468_v45, 4  ;;  %v640_v12 = vunpack.c.l.b16 %v280_v46  ;;  %v4650_v26 = vcombine.low %v4578_v43, %v4581_v49  ;;  %v4075_v43 = vld [vmem:[#allocation5 + $0x10] ss:$20 sps:$4 sm:$0xff]   ;;  %v4089_v60 = vld [vmem:[#allocation5 + $0x88] ss:$20 sps:$4 sm:$0xff]  }
  0xbd   :  { %v358_v9 = vpack.i.bf16 %v357_v47, %v357_v47  ;;  %v433_v11 = vmax.f32 %v431_v15, %v432_v50  ;;  %v643_v52 = vunpack.c.l.b16 %v319_v2  ;;  %v677_v17 = vsel %vm656_vm2, %v637_v8, %v634_v1  ;;  %v4673_v39 = vld [vmem:[#allocation2] sm:$0xff]  ;;  %v4675_v15 = vld [vmem:[#allocation2 + $0xc] sm:$0xff]  ;;  %v4096_v47 = vld [vmem:[#allocation7 + $0x78] ss:$20 sps:$4 sm:$0xff]  }
  0xbe   :  { %v396_v13 = vmax.f32 %v394_v44, %v395_v3  ;;  %v470_v14 = vmax.f32 %v468_v45, %v469_v4  ;;  %v678_v57 = vsel %vm658_vm3, %v640_v12, %v677_v17  ;;  %v4654_v55 = vcombine.low %v4590_v61, %v4593_v6  ;;  %v4091_v41 = vld [vmem:[#allocation7 + $0x50] ss:$20 sps:$4 sm:$0xff]   ;;  %v4094_v44 = vld [vmem:[#allocation5 + $0xb0] ss:$20 sps:$4 sm:$0xff]   ;;  %v4105_v8 = vld [vmem:[#allocation5 + $0x268] ss:$20 sps:$4 sm:$0xff]  }
  0xbf   :  { %v434_v56 = vrot.slane %v433_v11, 1  ;;  %v646_v18 = vunpack.c.l.b16 %v358_v9  ;;  %v679_v22 = vsel %vm660_vm4, %v643_v52, %v678_v57  ;;  %v4659_v53 = vcombine.low %v4595_v7, %v4597_v10  ;;  %v4078_v7 = vld [vmem:[#allocation5 + $0x38] ss:$20 sps:$4 sm:$0xff]   ;;  %v4100_v1 = vld [vmem:[#allocation5 + $0x240] ss:$20 sps:$4 sm:$0xff]  }
  0xc0   :  { %v397_v19 = vpack.i.bf16 %v396_v13, %v396_v13  ;;  %v471_v20 = vrot.slane %v470_v14, 2  ;;  %v4665_v61 = vcombine.low %v4599_v51, %v4608_v5  ;;  %v1164_v10 = vand.u32 %v4079_v32, %v4521_v63  ;;  %v4081_v51 = vld [vmem:[#allocation7] ss:$20 sps:$4 sm:$0xff]   ;;  %v4084_v5 = vld [vmem:[#allocation5 + $0x60] ss:$20 sps:$4 sm:$0xff]  }
  0xc1   :  { %v435_v16 = vmax.f32 %v433_v11, %v434_v56  ;;  %v680_v0 = vsel %vm662_vm5, %v646_v18, %v679_v22  ;;  %v4679_v40 = vcombine.high %v4673_v39, %v4675_v15  ;;  %v4095_v45 = vld [vmem:[#allocation5 + $0x218] ss:$20 sps:$4 sm:$0xff]   ;;  %v4103_v2 = vld [vmem:[#allocation7 + $0xa4] ss:$20 sps:$4 sm:$0xff]   ;;  %v4101_v3 = vld [vmem:[#allocation7 + $0xa0] ss:$20 sps:$4 sm:$0xff]  }
  0xc2   :  { %v472_v23 = vmax.f32 %v470_v14, %v471_v20  ;;  %v649_v24 = vunpack.c.l.b16 %v397_v19  ;;  %v4098_v46 = vld [vmem:[#allocation7 + $0x7c] ss:$20 sps:$4 sm:$0xff]   ;;  %v4104_v4 = vld [vmem:[#allocation5 + $0x100] ss:$20 sps:$4 sm:$0xff]   ;;  %v4108_v9 = vld [vmem:[#allocation7 + $0xcc] ss:$20 sps:$4 sm:$0xff]  }
  0xc3   :  { %v436_v21 = vpack.i.bf16 %v435_v16, %v435_v16  ;;  %v4099_v50 = vld [vmem:[#allocation5 + $0xd8] ss:$20 sps:$4 sm:$0xff]   ;;  %v4109_v12 = vld [vmem:[#allocation5 + $0x128] ss:$20 sps:$4 sm:$0xff]   ;;  %v4112_v13 = vld [vmem:[#allocation7 + $0xf4] ss:$20 sps:$4 sm:$0xff]  }
  0xc4   :  { %v473_v25 = vrot.slane %v472_v23, 1  ;;  %v681_v59 = vsel %vm664_vm6, %v649_v24, %v680_v0  ;;  %v4106_v11 = vld [vmem:[#allocation7 + $0xc8] ss:$20 sps:$4 sm:$0xff]   ;;  %v4115_v14 = vld [vmem:[#allocation7 + $0xc] ss:$20 sps:$4 sm:$0xff]  }
  0xc5   :  { %v652_v48 = vunpack.c.l.b16 %v436_v21  ;;  %v4110_v52 = vld [vmem:[#allocation7 + $0xf0] ss:$20 sps:$4 sm:$0xff]   ;;  %v4113_v17 = vld [vmem:[#allocation7 + $0x8] ss:$20 sps:$4 sm:$0xff]   ;;  %v4116_v57 = vld [vmem:[#allocation7 + $0x118] ss:$20 sps:$4 sm:$0xff]  }
  0xc6   :  { %v474_v27 = vmax.f32 %v472_v23, %v473_v25  ;;  %v4118_v56 = vld [vmem:[#allocation7 + $0x11c] ss:$20 sps:$4 sm:$0xff]   ;;  %v4121_v18 = vld [vmem:[#allocation7 + $0x34] ss:$20 sps:$4 sm:$0xff]   ;;  %v4124_v20 = vld [vmem:[#allocation7 + $0x144] ss:$20 sps:$4 sm:$0xff]  }
  0xc7   :  { %v682_v29 = vsel %vm666_vm7, %v652_v48, %v681_v59  ;;  %v4119_v19 = vld [vmem:[#allocation7 + $0x30] ss:$20 sps:$4 sm:$0xff]   ;;  %v4122_v16 = vld [vmem:[#allocation7 + $0x140] ss:$20 sps:$4 sm:$0xff]   ;;  %v4125_v23 = vld [vmem:[#allocation7 + $0x58] ss:$20 sps:$4 sm:$0xff]  }
  0xc8   :  { %v475_v28 = vpack.i.bf16 %v474_v27, %v474_v27  ;;  %v4127_v22 = vld [vmem:[#allocation7 + $0x5c] ss:$20 sps:$4 sm:$0xff]   ;;  %v4130_v24 = vld [vmem:[#allocation7 + $0x16c] ss:$20 sps:$4 sm:$0xff]   ;;  %v4133_v21 = vld [vmem:[#allocation7 + $0x84] ss:$20 sps:$4 sm:$0xff]  }
  0xc9   :  { %v4131_v0 = vld [vmem:[#allocation7 + $0x80] ss:$20 sps:$4 sm:$0xff]   ;;  %v4134_v27 = vld [vmem:[#allocation7 + $0x190] ss:$20 sps:$4 sm:$0xff]   ;;  %v4137_v59 = vld [vmem:[#allocation7 + $0xa8] ss:$20 sps:$4 sm:$0xff]  }
  0xca   :  { %v655_v31 = vunpack.c.l.b16 %v475_v28  ;;  %v4136_v25 = vld [vmem:[#allocation7 + $0x194] ss:$20 sps:$4 sm:$0xff]   ;;  %v4139_v48 = vld [vmem:[#allocation7 + $0xac] ss:$20 sps:$4 sm:$0xff]   ;;  %v4142_v28 = vld [vmem:[#allocation7 + $0x1bc] ss:$20 sps:$4 sm:$0xff]  }
  0xcb   :  { %v4143_v32 = vld [vmem:[#allocation7 + $0xd0] ss:$20 sps:$4 sm:$0xff]  }
  0xcc   :  { %v683_v49 = vsel %vm668_vm8, %v655_v31, %v682_v29  ;;  %v4145_v29 = vld [vmem:[#allocation7 + $0xd4] ss:$20 sps:$4 sm:$0xff]   ;;  %v4140_v31 = vld [vmem:[#allocation7 + $0x1b8] ss:$20 sps:$4 sm:$0xff]  }
  0xcd   :  { %v686_v6 = vpack.c.b16 %v683_v49, %v683_v49  ;;  %v4151_v49 = vld [vmem:[#allocation7 + $0xfc] ss:$20 sps:$4 sm:$0xff]  }
  0xcf   :  { %3504 = vmatmul.mubr.msk.bf16.vlgmr.msra.gmra.mrb[0].mxu0 %vm1144_vm10, %v686_v6  ;;  %3505 = vmatmul.mubr.msk.bf16.vlgmr.msra.gmra.mrb[0].mxu1 %vm1144_vm10, %v686_v6 }
  0xd0   :  { %3661 = vmatpush3.bf16.msra.mxu0 %v4075_v43  ;;  %3819 = vmatpush3.bf16.msra.mxu1 %v4076_v33  ;;  %v4148_v43 = vld [vmem:[#allocation7 + $0x1e4] ss:$20 sps:$4 sm:$0xff]   ;;  %v4146_v33 = vld [vmem:[#allocation7 + $0x1e0] ss:$20 sps:$4 sm:$0xff]  }
  0xd1   :  { %3662 = vmatprep.subr.bf16.mxu0 %v4077_v58  ;;  %3820 = vmatprep.subr.bf16.mxu1 %v4400_v30  ;;  %v4154_v58 = vld [vmem:[#allocation7 + $0x20c] ss:$20 sps:$4 sm:$0xff]  }
  0xd2   :  { %3822 = vmatprep.mubr.msk.bf16.mxu1 %vm4401_vm11, %v4400_v30  ;;  %1362 = vmatprep.mubr.bf16.mxu0 %v4571_v42  ;;  %v4090_v30 = vld [vmem:[#allocation5 + $0x1f0] ss:$20 sps:$4 sm:$0xff]  }
  0xd3   :  { %v4093_v42 = vld [vmem:[#allocation7 + $0x54] ss:$20 sps:$4 sm:$0xff]  }
  0xd4   :  { %3663 = vmatpush3.bf16.msra.mxu0 %v4078_v7  ;;  %3821 = vmatpush3.bf16.msra.mxu1 %v1164_v10  ;;  %v4157_v7 = vld [vmem:[#allocation7 + $0x124] ss:$20 sps:$4 sm:$0xff]   ;;  %v4152_v10 = vld [vmem:[#allocation7 + $0x208] ss:$20 sps:$4 sm:$0xff]  }
  0xd5   :  { %3664 = vmatprep.subr.bf16.mxu0 %v4080_v34  ;;  %2339 = vmatprep.subr.bf16.mxu1 %v4083_v35  ;;  %v4155_v34 = vld [vmem:[#allocation7 + $0x120] ss:$20 sps:$4 sm:$0xff]  }
  0xd6   :  { %v4160_v35 = vld [vmem:[#allocation7 + $0x234] ss:$20 sps:$4 sm:$0xff]  }
  0xd7   :  { %3823 = vmatmul.mubr.msk.bf16.vlgmr.msra.gmra.mrb[4].mxu1 %vm1144_vm10, %v686_v6  ;;  %v4149_v6 = vld [vmem:[#allocation7 + $0xf8] ss:$20 sps:$4 sm:$0xff]  }
  0xd8   :  { %3665 = vmatpush3.bf16.msra.mxu0 %v4084_v5  ;;  %2340 = vmatpush1.bf16.msra.mxu1 %v4081_v51  ;;  %v4163_v51 = vld [vmem:[#allocation7 + $0x14c] ss:$20 sps:$4 sm:$0xff]   ;;  %v4158_v5 = vld [vmem:[#allocation7 + $0x230] ss:$20 sps:$4 sm:$0xff]  }
  0xd9   :  { %3666 = vmatprep.subr.bf16.mxu0 %v4085_v36  ;;  %2341 = vmatprep.subr.bf16.mxu1 %v4088_v37  ;;  %v4161_v36 = vld [vmem:[#allocation7 + $0x148] ss:$20 sps:$4 sm:$0xff]  }
  0xda   :  { %2371 = vmatprep.mubr.bf16.mxu1 %v4679_v40  ;;  %v4166_v37 = vld [vmem:[#allocation7 + $0x25c] ss:$20 sps:$4 sm:$0xff]  }
  0xdc   :  { %3667 = vmatpush3.bf16.msra.mxu0 %v4089_v60  ;;  %2342 = vmatpush1.bf16.msra.mxu1 %v4086_v38  ;;  %v4169_v38 = vld [vmem:[#allocation7 + $0x174] ss:$20 sps:$4 sm:$0xff]  }
  0xdd   :  { %3668 = vmatprep.subr.bf16.mxu0 %v4090_v30  ;;  %2343 = vmatprep.subr.bf16.mxu1 %v4093_v42  ;;  %v1834_v60 = vld [vmem:[#allocation7 + $0x2a8] sm:$0x11]  ;;  %v4167_v42 = vld [vmem:[#allocation7 + $0x170] ss:$20 sps:$4 sm:$0xff]  }
  0xde   :  { %v4164_v30 = vld [vmem:[#allocation7 + $0x258] ss:$20 sps:$4 sm:$0xff]  }
  0xe0   :  { %3669 = vmatpush3.bf16.msra.mxu0 %v4094_v44  ;;  %2344 = vmatpush1.bf16.msra.mxu1 %v4091_v41  ;;  %v4174_v41 = vld [vmem:[#allocation7 + $0x19c] ss:$20 sps:$4 sm:$0xff]   ;;  %v4180_v44 = vld [vmem:[#allocation7 + $0x284] ss:$20 sps:$4 sm:$0xff]  }
  0xe1   :  { %3670 = vmatprep.subr.bf16.mxu0 %v4095_v45  ;;  %2345 = vmatprep.subr.bf16.mxu1 %v4098_v46  ;;  %v3605_v45 = vcombine.high %v1834_v60, %v1834_v60  ;;  %v4687_v46 = vcombine.low %v4673_v39, %v4675_v15  ;;  %v4185_v15 = vld [vmem:[#allocation7 + $0x1ec] ss:$20 sps:$4 sm:$0xff]  }
  0xe4   :  { %3671 = vmatpush3.bf16.msra.mxu0 %v4099_v50  ;;  %2346 = vmatpush1.bf16.msra.mxu1 %v4096_v47  ;;  %v4172_v47 = vld [vmem:[#allocation7 + $0x198] ss:$20 sps:$4 sm:$0xff]   ;;  %v4178_v50 = vld [vmem:[#allocation7 + $0x280] ss:$20 sps:$4 sm:$0xff]  }
  0xe5   :  { %3672 = vmatprep.subr.bf16.mxu0 %v4100_v1  ;;  %2347 = vmatprep.subr.bf16.mxu1 %v4103_v2  ;;  %v3604_v1 = vcombine.low %v1834_v60, %v1834_v60  ;;  %v4177_v2 = vld [vmem:[#allocation7 + $0x1c4] ss:$20 sps:$4 sm:$0xff]   ;;  %v4225_v60 = vld [vmem:[#allocation7 + $0x268] ss:$20 sps:$4 sm:$0xff]  }
  0xe7   :  { %v2325_v39 = vand.u32 %v3604_v1, %v4521_v63  ;;  %v4236_v1 = vld [vmem:[#allocation8 + $0x60] sm:$0xff]  }
  0xe8   :  { %3673 = vmatpush3.bf16.msra.mxu0 %v4104_v4  ;;  %2348 = vmatpush1.bf16.msra.mxu1 %v4101_v3  ;;  %v4265_v3 = vld [vmem:[#allocation2 + $0x18] sm:$0xff]  ;;  %v4266_v4 = vld [vmem:[#allocation2 + $0x24] sm:$0xff] }
  0xe9   :  { %3674 = vmatprep.subr.bf16.mxu0 %v4105_v8  ;;  %2349 = vmatprep.subr.bf16.mxu1 %v4108_v9  ;;  %v4689_v8 = vcombine.high %v4265_v3, %v4266_v4  ;;  %v2328_v9 = vand.u32 %v3605_v45, %v4521_v63  ;;  %v4231_v45 = vld [vmem:[#allocation8 + $0x8] sm:$0xff]  }
  0xec   :  { %3675 = vmatpush3.bf16.msra.mxu0 %v4109_v12  ;;  %2350 = vmatpush1.bf16.msra.mxu1 %v4106_v11  ;;  %v4175_v11 = vld [vmem:[#allocation7 + $0x1c0] ss:$20 sps:$4 sm:$0xff]   ;;  %v4205_v12 = vld [vmem:[#allocation7 + $0x150] ss:$20 sps:$4 sm:$0xff]  }
  0xed   :  { %2351 = vmatprep.subr.bf16.mxu1 %v4112_v13  ;;  %2485 = vmatprep.subr.bf16.mxu0 %v4115_v14  ;;  %v4695_v13 = vcombine.low %v4265_v3, %v4266_v4  ;;  %v4183_v14 = vld [vmem:[#allocation7 + $0x1e8] ss:$20 sps:$4 sm:$0xff]   ;;  %v4240_v4 = vld [vmem:[#allocation8 + $0x70] sm:$0xff]  }
  0xee   :  { %v4238_v3 = vld [vmem:[#allocation8 + $0x68] sm:$0xff]  }
  0xef   :  { %1363 = vmatmul.mubr.bf16.vlgmr.msra.gmra.mrb[4].mxu0 %v4632_v54  ;;  %v4128_v54 = vld [vmem:[#allocation7 + $0x168] ss:$20 sps:$4 sm:$0xff]  }
  0xf0   :  { %2352 = vmatpush1.bf16.msra.mxu1 %v4110_v52  ;;  %2486 = vmatpush1.bf16.msra.mxu0 %v4113_v17  ;;  %v4267_v52 = vld [vmem:[#allocation2 + $0x30] sm:$0xff]  ;;  %v4268_v17 = vld [vmem:[#allocation2 + $0x3c] sm:$0xff] }
  0xf1   :  { %2353 = vmatprep.subr.bf16.mxu1 %v4118_v56  ;;  %2487 = vmatprep.subr.bf16.mxu0 %v4121_v18  ;;  %v4697_v56 = vcombine.high %v4267_v52, %v4268_v17  ;;  %v4188_v18 = vld [vmem:[#allocation7 + $0x214] ss:$20 sps:$4 sm:$0xff]  }
  0xf2   :  { %2517 = vmatprep.mubr.bf16.mxu0 %v4679_v40 }
  0xf4   :  { %2354 = vmatpush1.bf16.msra.mxu1 %v4116_v57  ;;  %2488 = vmatpush1.bf16.msra.mxu0 %v4119_v19  ;;  %v4186_v57 = vld [vmem:[#allocation7 + $0x210] ss:$20 sps:$4 sm:$0xff]  }
  0xf5   :  { %2355 = vmatprep.subr.bf16.mxu1 %v4124_v20  ;;  %2489 = vmatprep.subr.bf16.mxu0 %v4127_v22  ;;  %v4193_v19 = vld [vmem:[#allocation7 + $0x23c] ss:$20 sps:$4 sm:$0xff]   ;;  %v4701_v20 = vcombine.low %v4267_v52, %v4268_v17  ;;  %v4191_v22 = vld [vmem:[#allocation7 + $0x238] ss:$20 sps:$4 sm:$0xff]  }
  0xf8   :  { %2356 = vmatpush1.bf16.msra.mxu1 %v4122_v16  ;;  %2490 = vmatpush1.bf16.msra.mxu0 %v4125_v23  ;;  %v4269_v16 = vld [vmem:[#allocation2 + $0x48] sm:$0xff]  ;;  %v4270_v23 = vld [vmem:[#allocation2 + $0x54] sm:$0xff] }
  0xf9   :  { %2357 = vmatprep.subr.bf16.mxu1 %v4130_v24  ;;  %2491 = vmatprep.subr.bf16.mxu0 %v4133_v21  ;;  %v4703_v24 = vcombine.high %v4269_v16, %v4270_v23  ;;  %v4196_v21 = vld [vmem:[#allocation7 + $0x264] ss:$20 sps:$4 sm:$0xff]  }
  0xfc   :  { %2358 = vmatpush1.bf16.msra.mxu1 %v4128_v54  ;;  %2492 = vmatpush1.bf16.msra.mxu0 %v4131_v0  ;;  %v1835_v54 = vld [vmem:[#allocation7 + $0x2b0] sm:$0x11] }
  0xfd   :  { %2359 = vmatprep.subr.bf16.mxu1 %v4136_v25  ;;  %2493 = vmatprep.subr.bf16.mxu0 %v4139_v48  ;;  %v4194_v0 = vld [vmem:[#allocation7 + $0x260] ss:$20 sps:$4 sm:$0xff]   ;;  %v3607_v48 = vcombine.high %v1835_v54, %v1835_v54 }
  0xfe   :  { %v4203_v25 = vld [vmem:[#allocation7 + $0x28c] ss:$20 sps:$4 sm:$0xff]  }
 0x100   :  { %2360 = vmatpush1.bf16.msra.mxu1 %v4134_v27  ;;  %2494 = vmatpush1.bf16.msra.mxu0 %v4137_v59  ;;  %v4707_v27 = vcombine.low %v4269_v16, %v4270_v23  ;;  %v4201_v59 = vld [vmem:[#allocation7 + $0x288] ss:$20 sps:$4 sm:$0xff]  }
 0x101   :  { %2361 = vmatprep.subr.bf16.mxu1 %v4142_v28  ;;  %2495 = vmatprep.subr.bf16.mxu0 %v4145_v29  ;;  %v3606_v28 = vcombine.low %v1835_v54, %v1835_v54  ;;  %v2334_v29 = vand.u32 %v3607_v48, %v4521_v63  ;;  %v4252_v16 = vld [vmem:[#allocation8 + $0xe0] sm:$0xff]  }
 0x104   :  { %2362 = vmatpush1.bf16.msra.mxu1 %v4140_v31  ;;  %2496 = vmatpush1.bf16.msra.mxu0 %v4143_v32  ;;  %v2331_v31 = vand.u32 %v3606_v28, %v4521_v63  ;;  %v4223_v32 = vld [vmem:[#allocation7 + $0x290] ss:$20 sps:$4 sm:$0xff]  }
 0x105   :  { %2363 = vmatprep.subr.bf16.mxu1 %v4148_v43  ;;  %2497 = vmatprep.subr.bf16.mxu0 %v4151_v49  ;;  %v4206_v43 = vld [vmem:[#allocation7 + $0x10] ss:$20 sps:$4 sm:$0xff]   ;;  %v4207_v49 = vld [vmem:[#allocation7 + $0x178] ss:$20 sps:$4 sm:$0xff]  }
 0x108   :  { %2364 = vmatpush1.bf16.msra.mxu1 %v4146_v33  ;;  %2498 = vmatpush1.bf16.msra.mxu0 %v4149_v6  ;;  %v4208_v33 = vld [vmem:[#allocation7 + $0x38] ss:$20 sps:$4 sm:$0xff]   ;;  %v4212_v6 = vld [vmem:[#allocation7 + $0x1a0] ss:$20 sps:$4 sm:$0xff]  }
 0x109   :  { %2365 = vmatprep.subr.bf16.mxu1 %v4154_v58  ;;  %2499 = vmatprep.subr.bf16.mxu0 %v4157_v7  ;;  %v4213_v58 = vld [vmem:[#allocation7 + $0x60] ss:$20 sps:$4 sm:$0xff]   ;;  %v4214_v7 = vld [vmem:[#allocation7 + $0x1c8] ss:$20 sps:$4 sm:$0xff]  }
 0x10c   :  { %2366 = vmatpush1.bf16.msra.mxu1 %v4152_v10  ;;  %2500 = vmatpush1.bf16.msra.mxu0 %v4155_v34  ;;  %v4215_v10 = vld [vmem:[#allocation7 + $0x88] ss:$20 sps:$4 sm:$0xff]   ;;  %v4217_v34 = vld [vmem:[#allocation7 + $0x1f0] ss:$20 sps:$4 sm:$0xff]  }
 0x10d   :  { %2367 = vmatprep.subr.bf16.mxu1 %v4160_v35  ;;  %2501 = vmatprep.subr.bf16.mxu0 %v4163_v51  ;;  %v4218_v35 = vld [vmem:[#allocation7 + $0xb0] ss:$20 sps:$4 sm:$0xff]   ;;  %v4219_v51 = vld [vmem:[#allocation7 + $0x218] ss:$20 sps:$4 sm:$0xff]  }
 0x110   :  { %2368 = vmatpush1.bf16.msra.mxu1 %v4158_v5  ;;  %2502 = vmatpush1.bf16.msra.mxu0 %v4161_v36  ;;  %v4220_v5 = vld [vmem:[#allocation7 + $0xd8] ss:$20 sps:$4 sm:$0xff]   ;;  %v4222_v36 = vld [vmem:[#allocation7 + $0x240] ss:$20 sps:$4 sm:$0xff]  }
 0x111   :  { %2369 = vmatprep.subr.bf16.mxu1 %v4166_v37  ;;  %2503 = vmatprep.subr.bf16.mxu0 %v4169_v38  ;;  %v4227_v37 = vld [vmem:[#allocation7 + $0x2b8] ss:$0 sps:$4 sm:$0x11]   ;;  %v4224_v38 = vld [vmem:[#allocation7 + $0x100] ss:$20 sps:$4 sm:$0xff]  }
 0x114   :  { %2370 = vmatpush1.bf16.msra.mxu1 %v4164_v30  ;;  %2504 = vmatpush1.bf16.msra.mxu0 %v4167_v42  ;;  %v2337_v30 = vand.u32 %v4227_v37, %v4521_v63  ;;  %v4226_v42 = vld [vmem:[#allocation7 + $0x128] ss:$20 sps:$4 sm:$0xff]  }
 0x115   :  { %2505 = vmatprep.subr.bf16.mxu0 %v4174_v41  ;;  %2412 = vmatprep.subr.bf16.mxu1 %v4180_v44  ;;  %v4228_v41 = vld [vmem:[#allocation8 + $0x40] sm:$0xff]   ;;  %v4230_v44 = vld [vmem:[#allocation8 + $0x48] sm:$0xff]  }
 0x116   :  { %v4229_v63 = vld [vmem:[#allocation8] sm:$0xff]  }
 0x117   :  { %2372 = vmatmul.mubr.bf16.vlgmr.msra.gmra.mrb[8].mxu1 %v4687_v46 }
 0x118   :  { %2506 = vmatpush1.bf16.msra.mxu0 %v4172_v47  ;;  %2413 = vmatpush1.bf16.msra.mxu1 %v4178_v50  ;;  %v4233_v47 = vld [vmem:[#allocation8 + $0x10] sm:$0xff]   ;;  %v4234_v50 = vld [vmem:[#allocation8 + $0x58] sm:$0xff]  }
 0x119   :  { %2507 = vmatprep.subr.bf16.mxu0 %v4177_v2  ;;  %2381 = vmatprep.mubr.bf16.mxu1 %v4689_v8  ;;  %v4237_v2 = vld [vmem:[#allocation8 + $0x20] sm:$0xff]  }
 0x11a   :  { %2414 = vmatprep.subr.bf16.mxu1 %v2328_v9  ;;  %v4242_v9 = vld [vmem:[#allocation8 + $0x30] sm:$0xff]  }
 0x11c   :  { %2508 = vmatpush1.bf16.msra.mxu0 %v4175_v11  ;;  %2415 = vmatpush1.bf16.msra.mxu1 %v2325_v39  ;;  %v4243_v11 = vld [vmem:[#allocation8 + $0x80] sm:$0xff]   ;;  %v4245_v39 = vld [vmem:[#allocation8 + $0xc8] sm:$0xff]  }
 0x11d   :  { %2509 = vmatprep.subr.bf16.mxu0 %v4185_v15  ;;  %3685 = vmatprep.subr.bf16.mxu1 %v4205_v12  ;;  %v4246_v15 = vld [vmem:[#allocation8 + $0x38] sm:$0xff]  }
 0x11f   :  { %2382 = vmatmul.mubr.bf16.gmra.mrb[12].mxu1 %v4695_v13 }
 0x120   :  { %2510 = vmatpush1.bf16.msra.mxu0 %v4183_v14  ;;  %2391 = vmatprep.mubr.bf16.mxu1 %v4697_v56  ;;  %v4250_v14 = vld [vmem:[#allocation8 + $0xd8] sm:$0xff]  }
 0x121   :  { %2511 = vmatprep.subr.bf16.mxu0 %v4188_v18  ;;  %v4771_v18 = vld [vmem:[%s4933_s3] sm:$0x1f]  ;;  %s4403_s3 = smov [#allocation10]  }
 0x122   :  { %s3379_s19 = sshll.u32 %s4403_s3, 4  ;;  %s3380_s19 = int_to_ptr.vmem [resolvable:$true] %s3379_s19 }
 0x123   :  { %s4359_s20 = scalar_lea.vmem %s3380_s19, 128  ;;  %p4364_p5 = scmp.lt.s32.totalorder %s3380_s19, %s3380_s19 }
 0x124   :  { %2512 = vmatpush1.bf16.msra.mxu0 %v4186_v57  ;;  %p4360_p4 = scmp.ne.s32.totalorder %s3380_s19, %s4359_s20  ;;  %p4365_p6 = scmp.lt.s32.totalorder %s4359_s20, %s4359_s20 }
 0x125   :  { %2513 = vmatprep.subr.bf16.mxu0 %v4193_v19  ;;  %v4402_v19 = vmov 1966171168  }
 0x126   :  { %p4366_p7 = por %p4365_p6, %p4364_p5 }
 0x127   :  { %2392 = vmatmul.mubr.bf16.gmra.mrb[16].mxu1 %v4701_v20 }
 0x128   :  { %2514 = vmatpush1.bf16.msra.mxu0 %v4191_v22  ;;  %2401 = vmatprep.mubr.bf16.mxu1 %v4703_v24  ;;  %p4367_p8 = pnand %p4366_p7, %p4360_p4 }
 0x129   :  { %2515 = vmatprep.subr.bf16.mxu0 %v4196_v21  ;;  %v4253_v21 = vld [vmem:[#allocation8 + $0xa0] sm:$0xff]  }
 0x12c   :  { %2516 = vmatpush1.bf16.msra.mxu0 %v4194_v0 }
 0x12d   :  { %2558 = vmatprep.subr.bf16.mxu0 %v4203_v25 }
 0x12f   :  { %2402 = vmatmul.mubr.bf16.gmra.mrb[20].mxu1 %v4707_v27  ;;  %2518 = vmatmul.mubr.bf16.vlgmr.msra.gmra.mrb[8].mxu0 %v4687_v46 }
 0x130   :  { %2559 = vmatpush1.bf16.msra.mxu0 %v4201_v59  ;;  %2444 = vmatprep.mubr.bf16.mxu1 %v4399_v62  ;;  %v4254_v59 = vld [vmem:[#allocation8 + $0xe8] sm:$0xff]  }
 0x131   :  { %2527 = vmatprep.mubr.bf16.mxu0 %v4689_v8  ;;  %2560 = vmatprep.subr.bf16.mxu0 %v2334_v29 }
 0x134   :  { %2561 = vmatpush1.bf16.msra.mxu0 %v2331_v31 }
 0x135   :  { %3826 = vmatprep.subr.bf16.mxu0 %v4223_v32 }
 0x137   :  { %3609 = vmatmul.mubr.msk.bf16.vlgmr.msra.gmra.mrb[8].mxu1 %vm1144_vm10, %v4650_v26  ;;  %2528 = vmatmul.mubr.bf16.gmra.mrb[12].mxu0 %v4695_v13 }
 0x138   :  { %3686 = vmatpush3.bf16.msra.mxu1 %v4206_v43  ;;  %2454 = vmatprep.mubr.bf16.mxu1 %v4399_v62 }
 0x139   :  { %3687 = vmatprep.subr.bf16.mxu1 %v4207_v49  ;;  %2537 = vmatprep.mubr.bf16.mxu0 %v4697_v56 }
 0x13c   :  { %3688 = vmatpush3.bf16.msra.mxu1 %v4208_v33 }
 0x13d   :  { %3689 = vmatprep.subr.bf16.mxu1 %v4212_v6 }
 0x13f   :  { %3610 = vmatmul.mubr.msk.bf16.gmra.mrb[12].mxu1 %vm1144_vm10, %v4654_v55  ;;  %2538 = vmatmul.mubr.bf16.gmra.mrb[16].mxu0 %v4701_v20 }
 0x140   :  { %3690 = vmatpush3.bf16.msra.mxu1 %v4213_v58  ;;  %2464 = vmatprep.mubr.bf16.mxu1 %v4399_v62 }
 0x141   :  { %3691 = vmatprep.subr.bf16.mxu1 %v4214_v7  ;;  %2547 = vmatprep.mubr.bf16.mxu0 %v4703_v24 }
 0x144   :  { %3692 = vmatpush3.bf16.msra.mxu1 %v4215_v10 }
 0x145   :  { %3693 = vmatprep.subr.bf16.mxu1 %v4217_v34  ;;  %v4255_v34 = vld [vmem:[#allocation8 + $0xa8] sm:$0xff]  }
 0x147   :  { %3611 = vmatmul.mubr.msk.bf16.gmra.mrb[16].mxu1 %vm1144_vm10, %v4659_v53  ;;  %2548 = vmatmul.mubr.bf16.gmra.mrb[20].mxu0 %v4707_v27 }
 0x148   :  { %3694 = vmatpush3.bf16.msra.mxu1 %v4218_v35  ;;  %2474 = vmatprep.mubr.bf16.mxu1 %v4399_v62 }
 0x149   :  { %3695 = vmatprep.subr.bf16.mxu1 %v4219_v51  ;;  %2590 = vmatprep.mubr.bf16.mxu0 %v4399_v62 }
 0x14c   :  { %3696 = vmatpush3.bf16.msra.mxu1 %v4220_v5 }
 0x14d   :  { %3697 = vmatprep.subr.bf16.mxu1 %v4222_v36 }
 0x14f   :  { %3612 = vmatmul.mubr.msk.bf16.gmra.mrb[20].mxu1 %vm1144_vm10, %v4665_v61  ;;  %3613 = vmatmul.mubr.msk.bf16.vlgmr.msra.gmra.mrb[8].mxu0 %vm1144_vm10, %v4650_v26 }
 0x150   :  { %3698 = vmatpush3.bf16.msra.mxu1 %v4224_v38  ;;  %3827 = vmatpush3.bf16.msra.mxu0 %v4223_v32 }
 0x151   :  { %3699 = vmatprep.subr.bf16.mxu1 %v4225_v60  ;;  %2600 = vmatprep.mubr.bf16.mxu0 %v4399_v62 }
 0x152   :  { %2663 = vmatprep.mubr.bf16.mxu1 %v4679_v40  ;;  %3828 = vmatprep.subr.bf16.mxu0 %v2337_v30  ;;  %v4232_v40 = vld [vmem:[#allocation8 + $0x50] sm:$0xff]  }
 0x154   :  { %3700 = vmatpush3.bf16.msra.mxu1 %v4226_v42  ;;  %3829 = vmatpush3.bf16.msra.mxu0 %v2337_v30  ;;  %v4256_v42 = vld [vmem:[#allocation8 + $0xf0] sm:$0xff]  }
 0x155   :  { %3731 = vmatprep.subr.bf16.mxu1 %v4228_v41  ;;  %v4257_v41 = vld [vmem:[#allocation8 + $0xb0] sm:$0xff]  }
 0x157   :  { %3614 = vmatmul.mubr.msk.bf16.gmra.mrb[12].mxu0 %vm1144_vm10, %v4654_v55  ;;  %2664 = vmatmul.mubr.bf16.vlgmr.msra.gmra.mrb[24].mxu1 %v4687_v46  ;;  %v4235_v46 = vld [vmem:[#allocation8 + $0x18] sm:$0xff]  }
 0x158   :  { %2610 = vmatprep.mubr.bf16.mxu0 %v4399_v62  ;;  %2671 = vmatprep.mubr.bf16.mxu1 %v4689_v8  ;;  %v4241_v8 = vld [vmem:[#allocation8 + $0xc0] sm:$0xff]  }
 0x159   :  { %3732 = vmatpush3.bf16.msra.mxu1 %v4229_v63  ;;  %3771 = vmatprep.subr.bf16.mxu0 %v4241_v8 }
 0x15a   :  { %3733 = vmatprep.subr.bf16.mxu1 %v4230_v44 }
 0x15d   :  { %3734 = vmatpush3.bf16.msra.mxu1 %v4231_v45 }
 0x15e   :  { %3735 = vmatprep.subr.bf16.mxu1 %v4232_v40 }
 0x15f   :  { %3615 = vmatmul.mubr.msk.bf16.gmra.mrb[16].mxu0 %vm1144_vm10, %v4659_v53  ;;  %2672 = vmatmul.mubr.bf16.gmra.mrb[28].mxu1 %v4695_v13  ;;  %v4249_v13 = vld [vmem:[#allocation8 + $0x90] sm:$0xff]  }
 0x160   :  { %2620 = vmatprep.mubr.bf16.mxu0 %v4399_v62  ;;  %2679 = vmatprep.mubr.bf16.mxu1 %v4697_v56  ;;  %v4239_v62 = vld [vmem:[#allocation8 + $0x28] sm:$0xff]   ;;  %v4251_v56 = vld [vmem:[#allocation8 + $0x98] sm:$0xff]  }
 0x161   :  { %3736 = vmatpush3.bf16.msra.mxu1 %v4233_v47 }
 0x162   :  { %3737 = vmatprep.subr.bf16.mxu1 %v4234_v50  ;;  %v4258_v50 = vld [vmem:[#allocation8 + $0xf8] sm:$0xff]  }
 0x165   :  { %3738 = vmatpush3.bf16.msra.mxu1 %v4235_v46 }
 0x166   :  { %3739 = vmatprep.subr.bf16.mxu1 %v4236_v1 }
 0x167   :  { %3616 = vmatmul.mubr.msk.bf16.gmra.mrb[20].mxu0 %vm1144_vm10, %v4665_v61  ;;  %2680 = vmatmul.mubr.bf16.gmra.mrb[32].mxu1 %v4701_v20  ;;  %v1421_v20 = vunpack.c.l.s4 %v4402_v19 }
 0x168   :  { %2687 = vmatprep.mubr.bf16.mxu1 %v4703_v24  ;;  %3830 = vmatprep.mubr.msk.bf16.mxu0 %vm1144_vm10, %v4650_v26  ;;  %v4244_v26 = vld [vmem:[#allocation8 + $0x78] sm:$0xff]  }
 0x169   :  { %3740 = vmatpush3.bf16.msra.mxu1 %v4237_v2  ;;  %v1422_v0 = vunpack.c.0.s8 %v1421_v20 }
 0x16a   :  { %3741 = vmatprep.subr.bf16.mxu1 %v4238_v3  ;;  %v4259_v3 = vld [vmem:[#allocation8 + $0xb8] sm:$0xff]  }
 0x16d   :  { %3742 = vmatpush3.bf16.msra.mxu1 %v4239_v62  ;;  %v4788_v62 = vld [vmem:[#allocation8 + $0x100] sm:$0xff]  }
 0x16e   :  { %3743 = vmatprep.subr.bf16.mxu1 %v4240_v4 }
 0x16f   :  { %2688 = vmatmul.mubr.bf16.gmra.mrb[36].mxu1 %v4707_v27  ;;  %3831 = vmatmul.mubr.msk.bf16.vlgmr.msra.gmra.mrb[24].mxu0 %vm1144_vm10, %v4654_v55  ;;  %v4247_v55 = vld [vmem:[#allocation8 + $0x88] sm:$0xff]  }
 0x170   :  { %3834 = vmatprep.mubr.msk.bf16.mxu0 %vm1144_vm10, %v4659_v53  ;;  %3772 = vmatpush3.bf16.msra.mxu0 %v4243_v11  ;;  %v583_v53 = vlaneseq }
 0x171   :  { %3744 = vmatpush3.bf16.msra.mxu1 %v4242_v9  ;;  %3773 = vmatprep.subr.bf16.mxu0 %v4245_v39 }
 0x172   :  { %3745 = vmatprep.subr.bf16.mxu1 %v4244_v26  ;;  %v4760_v12 = vshrl.u32 %v583_v53, 7 }
 0x174   :  { %3774 = vmatpush3.bf16.msra.mxu0 %v4247_v55  ;;  %v4763_v52 = vsub.s32 0, %v4760_v12  ;;  %v4766_v17 = vsub.s32 2, %v4760_v12  ;;  %v4774_v57 = vsub.s32 1, %v4760_v12  ;;  %v4777_v22 = vsub.s32 3, %v4760_v12 }
 0x175   :  { %3746 = vmatpush3.bf16.msra.mxu1 %v4246_v15  ;;  %v1425_v49 = vsub.s32 %v1422_v0, %v4760_v12  ;;  %v4792_v4 = vsub.s32 4, %v4760_v12 }
 0x176   :  { %v586_v23 = vrot.slane %v4771_v18, %v4763_v52  ;;  %v594_v24 = vrot.slane %v4771_v18, %v4766_v17  ;;  %v590_v54 = vrot.slane %v4771_v18, %v4774_v57  ;;  %v598_v25 = vrot.slane %v4771_v18, %v4777_v22  ;;  %3838 = vmatprep.subr.bf16.mxu1 %v4788_v62 }
 0x177   :  { %3835 = vmatmul.mubr.msk.bf16.gmra.mrb[28].mxu0 %vm1144_vm10, %v4665_v61  ;;  %v4248_v61 = vld [vmem:[#allocation8 + $0xd0] sm:$0xff]   ;;  %v602_v9 = vrot.slane %v4771_v18, %v4792_v4 }
 0x178   :  { %3775 = vmatprep.subr.bf16.mxu0 %v4248_v61 }
 0x179   :  { %3776 = vmatpush3.bf16.msra.mxu0 %v4249_v13 }
 0x17a   :  { %3777 = vmatprep.subr.bf16.mxu0 %v4250_v14 }
 0x17d   :  { %3778 = vmatpush3.bf16.msra.mxu0 %v4251_v56 }
 0x17e   :  { %3779 = vmatprep.subr.bf16.mxu0 %v4252_v16 }
 0x181   :  { %3780 = vmatpush3.bf16.msra.mxu0 %v4253_v21 }
 0x182   :  { %3781 = vmatprep.subr.bf16.mxu0 %v4254_v59 }
 0x185   :  { %3782 = vmatpush3.bf16.msra.mxu0 %v4255_v34 }
 0x186   :  { %3783 = vmatprep.subr.bf16.mxu0 %v4256_v42 }
 0x189   :  { %3784 = vmatpush3.bf16.msra.mxu0 %v4257_v41 }
 0x18a   :  { %3785 = vmatprep.subr.bf16.mxu0 %v4258_v50 }
 0x18d   :  { %3786 = vmatpush3.bf16.msra.mxu0 %v4259_v3 }
 0x1a2   :  { %v1241_v48 = vpop.f32.mrb[0].mxu0  ;;  %v1323_v27 = vpop.f32.mrb[0].mxu1 }
 0x1a3   :  { %v3852_v28 = vadd.f32 %v1241_v48, %v586_v23  ;;  %v3854_v29 = vadd.f32 %v1323_v27, %v594_v24  ;;  %v1243_v31 = vpop.f32.mrb[1].mxu0  ;;  %v1325_v32 = vpop.f32.mrb[1].mxu1 }
 0x1a4   :  { %v3853_v43 = vadd.f32 %v1243_v31, %v590_v54  ;;  %v3855_v33 = vadd.f32 %v1325_v32, %v598_v25  ;;  %v1245_v6 = vpop.f32.mrb[2].mxu0  ;;  %v1327_v58 = vpop.f32.mrb[2].mxu1 }
 0x1a5   :  { %v1246_v7 = vpop.f32.mrb[3].mxu0  ;;  %v1328_v10 = vpop.f32.mrb[3].mxu1 }
 0x1a6   :  { %v1415_v35 = vcombine.low %v3852_v28, %v3853_v43  ;;  %v1416_v51 = vcombine.high %v3852_v28, %v3853_v43  ;;  %v1417_v5 = vcombine.low %v3854_v29, %v3855_v33  ;;  %v1418_v36 = vcombine.high %v3854_v29, %v3855_v33 }
 0x1a8   :  { %v1426_v37 = vrot.slane %v1415_v35, %v1425_v49  ;;  %v1433_v38 = vrot.slane %v1416_v51, %v1425_v49  ;;  %v1440_v60 = vrot.slane %v1417_v5, %v1425_v49  ;;  %v1447_v30 = vrot.slane %v1418_v36, %v1425_v49 }
 0x1aa   :  { %v1462_v63 = vcombine.low %v1426_v37, %v1440_v60  ;;  %v1463_v44 = vcombine.high %v1426_v37, %v1440_v60  ;;  %v1464_v45 = vcombine.low %v1433_v38, %v1447_v30  ;;  %v1465_v40 = vcombine.high %v1433_v38, %v1447_v30  ;;  %v1404_v47 = vpop.f32.mrb[4].mxu1 }
 0x1ab   :  { %v3824_v46 = vpop.f32.mrb[5].mxu1 }
 0x1ac   :  { %v1407_v1 = vpop.f32.mrb[6].mxu1  ;;  %v1474_v14 = vrot.slane %v1462_v63, %v1425_v49  ;;  %v1481_v16 = vrot.slane %v1464_v45, %v1425_v49  ;;  %v1488_v23 = vrot.slane %v1463_v44, %v1425_v49  ;;  %v1495_v18 = vrot.slane %v1465_v40, %v1425_v49 }
 0x1ad   :  { %v3825_v2 = vpop.f32.mrb[7].mxu1  ;;  %v4261_v1 = vld [vmem:[#allocation8 + $0x108] sm:$0xff]  }
 0x1c2   :  { %v3676_v8 = vpop.f32.mrb[4].mxu0 }
 0x1c3   :  { %v3677_v11 = vpop.f32.mrb[5].mxu0 }
 0x1c4   :  { %v3678_v26 = vadd.f32 %v3677_v11, %v3676_v8  ;;  %v3679_v39 = vpop.f32.mrb[6].mxu0 }
 0x1c5   :  { %v3680_v15 = vpop.f32.mrb[7].mxu0 }
 0x1c6   :  { %v1365_v55 = vadd.f32 %v3678_v26, %v602_v9 }
 0x1c8   :  { %v1405_v53 = vadd.f32 %v1404_v47, %v1365_v55  ;;  %v4262_v55 = vld [vmem:[#allocation8 + $0x110] ss:$0 sps:$4 sm:$0x11]  }
 0x1ca   :  { %v1419_v61 = vcombine.high %v1405_v53, %v1405_v53  ;;  %v1454_v13 = vrot.slane %v1405_v53, %v1425_v49 }
 0x1cc   :  { %v1461_v56 = vrot.slane %v1419_v61, %v1425_v49  ;;  %v1466_v19 = vcombine.high %v1454_v13, %v1454_v13  ;;  %v1502_v20 = vrot.slane %v1454_v13, %v1425_v49 }
 0x1ce   :  { %v1467_v12 = vcombine.high %v1461_v56, %v1461_v56  ;;  %v1509_v24 = vrot.slane %v1461_v56, %v1425_v49  ;;  %v1516_v21 = vrot.slane %v1466_v19, %v1425_v49  ;;  %v4796_v54 = vcombine.low %v1474_v14, %v1502_v20 }
 0x1cf   :  { %v4798_v0 = vcombine.high %v1474_v14, %v1502_v20 }
 0x1d0   :  { %v1523_v25 = vrot.slane %v1467_v12, %v1425_v49  ;;  %v4800_v48 = vcombine.low %v1481_v16, %v1509_v24  ;;  %v4802_v27 = vcombine.high %v1481_v16, %v1509_v24  ;;  %v4804_v59 = vcombine.low %v1488_v23, %v1516_v21 }
 0x1d1   :  { %v4806_v28 = vcombine.high %v1488_v23, %v1516_v21  ;;  %v1535_v49 = vrot.slane %v4796_v54, %v4763_v52  ;;  %v1539_v6 = vrot.slane %v4796_v54, %v4774_v57  ;;  %v1575_v63 = vrot.slane %v4798_v0, %v4763_v52 }
 0x1d2   :  { %v4808_v29 = vcombine.low %v1495_v18, %v1523_v25  ;;  %v4810_v31 = vcombine.high %v1495_v18, %v1523_v25  ;;  %v1663_v32 = vrot.slane %v4802_v27, %v4766_v17  ;;  %v1555_v10 = vrot.slane %v4804_v59, %v4763_v52 }
 0x1d3   :  { %v1559_v51 = vrot.slane %v4804_v59, %v4774_v57  ;;  %v1579_v40 = vrot.slane %v4798_v0, %v4774_v57  ;;  %v1595_v46 = vrot.slane %v4806_v28, %v4763_v52  ;;  %v1599_v8 = vrot.slane %v4806_v28, %v4774_v57 }
 0x1d4   :  { %v1683_v43 = vrot.slane %v4810_v31, %v4766_v17  ;;  %v1615_v14 = vrot.slane %v4800_v48, %v4763_v52  ;;  %v1619_v20 = vrot.slane %v4800_v48, %v4774_v57  ;;  %v3111_v12 = vsel %vm1148_vm0, %v4262_v55, 0 }
 0x1d5   :  { %v1639_v18 = vrot.slane %v4808_v29, %v4774_v57 }
 0x20a   :  { %v2446_v33 = vpop.f32.mrb[8].mxu1 }
 0x20b   :  { %v3856_v58 = vadd.f32 %v2446_v33, %v1535_v49  ;;  %v2448_v7 = vpop.f32.mrb[9].mxu1 }
 0x20c   :  { %v3857_v34 = vadd.f32 %v2448_v7, %v1539_v6  ;;  %v2450_v35 = vpop.f32.mrb[10].mxu1 }
 0x20d   :  { %v3858_v5 = vadd.f32 %v2450_v35, %v1555_v10  ;;  %v2452_v36 = vpop.f32.mrb[11].mxu1  ;;  %v2761_v38 = vmax.f32 %v3856_v58, 0.0  ;;  %v1655_v35 = vrot.slane %v4802_v27, %v4763_v52 }
 0x20e   :  { %v3859_v37 = vadd.f32 %v2452_v36, %v1559_v51  ;;  %v2762_v30 = vmax.f32 %v3857_v34, 0.0  ;;  %v1543_v51 = vrot.slane %v4796_v54, %v4766_v17 }
 0x20f   :  { %v2766_v60 = vmax.f32 %v3858_v5, 0.0 }
 0x210   :  { %v2767_v42 = vmax.f32 %v3859_v37, 0.0 }
 0x211   :  { %v2801_v41 = vpack.c.bf16 %v2766_v60, %v2761_v38  ;;  %v1659_v38 = vrot.slane %v4802_v27, %v4774_v57  ;;  %v1547_v60 = vrot.slane %v4796_v54, %v4777_v22 }
 0x212   :  { %v2802_v44 = vpack.c.bf16 %v2767_v42, %v2762_v30  ;;  %v2456_v45 = vpop.f32.mrb[12].mxu1 }
 0x213   :  { %v3860_v47 = vadd.f32 %v2456_v45, %v1575_v63  ;;  %v2458_v50 = vpop.f32.mrb[13].mxu1  ;;  %v1563_v45 = vrot.slane %v4804_v59, %v4766_v17 }
 0x214   :  { %v3861_v2 = vadd.f32 %v2458_v50, %v1579_v40  ;;  %v2460_v3 = vpop.f32.mrb[14].mxu1  ;;  %3145 = vmatprep.mubr.bf16.mxu1 %v2802_v44  ;;  %v1675_v44 = vrot.slane %v4810_v31, %v4763_v52 }
 0x215   :  { %v3862_v9 = vadd.f32 %v2460_v3, %v1595_v46  ;;  %v2462_v11 = vpop.f32.mrb[15].mxu1  ;;  %3146 = vmatmul.mubr.bf16.vlgmr.msra.gmra.mrb[40].mxu1 %v2801_v41  ;;  %v2771_v39 = vmax.f32 %v3860_v47, 0.0 }
 0x216   :  { %v3863_v26 = vadd.f32 %v2462_v11, %v1599_v8  ;;  %3839 = vmatpush3.bf16.msra.mxu1 %v4788_v62  ;;  %v2772_v53 = vmax.f32 %v3861_v2, 0.0  ;;  %v1635_v62 = vrot.slane %v4808_v29, %v4763_v52  ;;  %v1567_v2 = vrot.slane %v4804_v59, %v4777_v22 }
 0x217   :  { %v2776_v15 = vmax.f32 %v3862_v9, 0.0  ;;  %3840 = vmatprep.subr.bf16.mxu1 %v4261_v1 }
 0x218   :  { %v2777_v61 = vmax.f32 %v3863_v26, 0.0 }
 0x219   :  { %v2806_v13 = vpack.c.bf16 %v2776_v15, %v2771_v39 }
 0x21a   :  { %v2807_v56 = vpack.c.bf16 %v2777_v61, %v2772_v53  ;;  %v2466_v19 = vpop.f32.mrb[16].mxu1  ;;  %3841 = vmatpush3.bf16.msra.mxu1 %v4261_v1  ;;  %v1679_v1 = vrot.slane %v4810_v31, %v4774_v57 }
 0x21b   :  { %v3864_v16 = vadd.f32 %v2466_v19, %v1615_v14  ;;  %v2468_v23 = vpop.f32.mrb[17].mxu1  ;;  %3928 = vmatprep.subr.msk.bf16.mxu1 %vm1148_vm0, %v4262_v55 }
 0x21c   :  { %v3865_v24 = vadd.f32 %v2468_v23, %v1619_v20  ;;  %v2470_v21 = vpop.f32.mrb[18].mxu1  ;;  %3153 = vmatprep.mubr.bf16.mxu1 %v2807_v56  ;;  %v1583_v20 = vrot.slane %v4798_v0, %v4766_v17 }
 0x21d   :  { %v3866_v25 = vadd.f32 %v2470_v21, %v1635_v62  ;;  %v2472_v49 = vpop.f32.mrb[19].mxu1  ;;  %3154 = vmatmul.mubr.bf16.gmra.mrb[44].mxu1 %v2806_v13  ;;  %v2781_v6 = vmax.f32 %v3864_v16, 0.0 }
 0x21e   :  { %v3867_v33 = vadd.f32 %v2472_v49, %v1639_v18  ;;  %3843 = vmatpush3.bf16.msra.mxu1 %v3111_v12  ;;  %v2782_v7 = vmax.f32 %v3865_v24, 0.0  ;;  %v1587_v24 = vrot.slane %v4798_v0, %v4777_v22  ;;  %v1603_v49 = vrot.slane %v4806_v28, %v4766_v17 }
 0x21f   :  { %v2786_v58 = vmax.f32 %v3866_v25, 0.0 }
 0x220   :  { %v2787_v10 = vmax.f32 %v3867_v33, 0.0  ;;  %v1607_v33 = vrot.slane %v4806_v28, %v4777_v22 }
 0x221   :  { %v2811_v34 = vpack.c.bf16 %v2786_v58, %v2781_v6 }
 0x222   :  { %v2812_v5 = vpack.c.bf16 %v2787_v10, %v2782_v7  ;;  %v2476_v36 = vpop.f32.mrb[20].mxu1  ;;  %v2592_v37 = vpop.f32.mrb[8].mxu0 }
 0x223   :  { %v3868_v30 = vadd.f32 %v2476_v36, %v1655_v35  ;;  %v3872_v42 = vadd.f32 %v2592_v37, %v1543_v51  ;;  %v2478_v41 = vpop.f32.mrb[21].mxu1  ;;  %v2594_v63 = vpop.f32.mrb[9].mxu0 }
 0x224   :  { %v3869_v40 = vadd.f32 %v2478_v41, %v1659_v38  ;;  %v3873_v47 = vadd.f32 %v2594_v63, %v1547_v60  ;;  %v2480_v50 = vpop.f32.mrb[22].mxu1  ;;  %v2596_v46 = vpop.f32.mrb[10].mxu0  ;;  %3161 = vmatprep.mubr.bf16.mxu1 %v2812_v5  ;;  %v1571_v60 = vrot.slane %v4804_v59, %v4792_v4  ;;  %v1643_v59 = vrot.slane %v4808_v29, %v4766_v17 }
 0x225   :  { %v3870_v3 = vadd.f32 %v2480_v50, %v1675_v44  ;;  %v3874_v8 = vadd.f32 %v2596_v46, %v1563_v45  ;;  %v2482_v9 = vpop.f32.mrb[23].mxu1  ;;  %v2598_v11 = vpop.f32.mrb[11].mxu0  ;;  %3162 = vmatmul.mubr.bf16.gmra.mrb[48].mxu1 %v2811_v34  ;;  %v2791_v39 = vmax.f32 %v3868_v30, 0.0  ;;  %v2763_v15 = vmax.f32 %v3872_v42, 0.0 }
 0x226   :  { %v3871_v52 = vadd.f32 %v2482_v9, %v1679_v1  ;;  %v3875_v26 = vadd.f32 %v2598_v11, %v1567_v2  ;;  %v2792_v61 = vmax.f32 %v3869_v40, 0.0  ;;  %v2764_v13 = vmax.f32 %v3873_v47, 0.0 }
 0x227   :  { %v2796_v55 = vmax.f32 %v3870_v3, 0.0  ;;  %v2768_v53 = vmax.f32 %v3874_v8, 0.0  ;;  %v1551_v34 = vrot.slane %v4796_v54, %v4792_v4  ;;  %v1623_v54 = vrot.slane %v4800_v48, %v4766_v17 }
 0x228   :  { %v2797_v14 = vmax.f32 %v3871_v52, 0.0  ;;  %v2769_v56 = vmax.f32 %v3875_v26, 0.0  ;;  %v1627_v46 = vrot.slane %v4800_v48, %v4777_v22  ;;  %v1647_v26 = vrot.slane %v4808_v29, %v4777_v22 }
 0x229   :  { %v2816_v19 = vpack.c.bf16 %v2796_v55, %v2791_v39  ;;  %v2803_v57 = vpack.c.bf16 %v2768_v53, %v2763_v15  ;;  %v1591_v39 = vrot.slane %v4798_v0, %v4792_v4  ;;  %v1667_v0 = vrot.slane %v4802_v27, %v4777_v22 }
 0x22a   :  { %v2817_v16 = vpack.c.bf16 %v2797_v14, %v2792_v61  ;;  %v2804_v23 = vpack.c.bf16 %v2769_v56, %v2764_v13  ;;  %v2602_v62 = vpop.f32.mrb[12].mxu0  ;;  %v3701_v12 = vpop.f32.mrb[24].mxu1  ;;  %v1611_v56 = vrot.slane %v4806_v28, %v4792_v4 }
 0x22b   :  { %v3876_v21 = vadd.f32 %v2602_v62, %v1583_v20  ;;  %v2604_v18 = vpop.f32.mrb[13].mxu0  ;;  %v3702_v25 = vpop.f32.mrb[25].mxu1 }
 0x22c   :  { %v3877_v6 = vadd.f32 %v2604_v18, %v1587_v24  ;;  %v3703_v58 = vadd.f32 %v3702_v25, %v3701_v12  ;;  %v2606_v7 = vpop.f32.mrb[14].mxu0  ;;  %v3704_v10 = vpop.f32.mrb[26].mxu1  ;;  %3169 = vmatprep.mubr.bf16.mxu1 %v2817_v16  ;;  %3210 = vmatprep.mubr.bf16.mxu0 %v2804_v23 }
 0x22d   :  { %v3878_v35 = vadd.f32 %v2606_v7, %v1603_v49  ;;  %v2608_v51 = vpop.f32.mrb[15].mxu0  ;;  %v3705_v5 = vpop.f32.mrb[27].mxu1  ;;  %3170 = vmatmul.mubr.bf16.gmra.mrb[52].mxu1 %v2816_v19  ;;  %3211 = vmatmul.mubr.bf16.vlgmr.msra.gmra.mrb[32].mxu0 %v2803_v57  ;;  %v2773_v30 = vmax.f32 %v3876_v21, 0.0  ;;  %v1687_v7 = vrot.slane %v4810_v31, %v4777_v22 }
 0x22e   :  { %v3879_v36 = vadd.f32 %v2608_v51, %v1607_v33  ;;  %v3706_v37 = vadd.f32 %v3705_v5, %v3704_v10  ;;  %v4869_v38 = vadd.f32 %v3703_v58, %v1551_v34  ;;  %v2774_v41 = vmax.f32 %v3877_v6, 0.0 }
 0x22f   :  { %v2778_v42 = vmax.f32 %v3878_v35, 0.0  ;;  %v1631_v10 = vrot.slane %v4800_v48, %v4792_v4 }
 0x230   :  { %v2779_v63 = vmax.f32 %v3879_v36, 0.0  ;;  %v4873_v44 = vadd.f32 %v3706_v37, %v1571_v60  ;;  %v1651_v37 = vrot.slane %v4808_v29, %v4792_v4  ;;  %v1671_v29 = vrot.slane %v4802_v27, %v4792_v4 }
 0x231   :  { %v2808_v45 = vpack.c.bf16 %v2778_v42, %v2773_v30 }
 0x232   :  { %v2809_v40 = vpack.c.bf16 %v2779_v63, %v2774_v41  ;;  %v2612_v47 = vpop.f32.mrb[16].mxu0  ;;  %v3707_v50 = vpop.f32.mrb[28].mxu1 }
 0x233   :  { %v3880_v1 = vadd.f32 %v2612_v47, %v1623_v54  ;;  %v2614_v2 = vpop.f32.mrb[17].mxu0  ;;  %v3708_v3 = vpop.f32.mrb[29].mxu1 }
 0x234   :  { %v3881_v8 = vadd.f32 %v2614_v2, %v1627_v46  ;;  %v3709_v9 = vadd.f32 %v3708_v3, %v3707_v50  ;;  %v2616_v11 = vpop.f32.mrb[18].mxu0  ;;  %v3710_v52 = vpop.f32.mrb[30].mxu1  ;;  %3218 = vmatprep.mubr.bf16.mxu0 %v2809_v40 }
 0x235   :  { %v3882_v15 = vadd.f32 %v2616_v11, %v1643_v59  ;;  %v2618_v55 = vpop.f32.mrb[19].mxu0  ;;  %v3711_v53 = vpop.f32.mrb[31].mxu1  ;;  %3219 = vmatmul.mubr.bf16.gmra.mrb[36].mxu0 %v2808_v45  ;;  %v2783_v19 = vmax.f32 %v3880_v1, 0.0 }
 0x236   :  { %v3883_v61 = vadd.f32 %v2618_v55, %v1647_v26  ;;  %v3712_v13 = vadd.f32 %v3711_v53, %v3710_v52  ;;  %v2674_v14 = vadd.f32 %v3709_v9, %v1591_v39  ;;  %v2784_v20 = vmax.f32 %v3881_v8, 0.0 }
 0x237   :  { %v2788_v57 = vmax.f32 %v3882_v15, 0.0  ;;  %v1691_v52 = vrot.slane %v4810_v31, %v4792_v4 }
 0x238   :  { %v2789_v16 = vmax.f32 %v3883_v61, 0.0  ;;  %v2677_v23 = vadd.f32 %v3712_v13, %v1611_v56 }
 0x239   :  { %v2813_v62 = vpack.c.bf16 %v2788_v57, %v2783_v19 }
 0x23a   :  { %v2814_v12 = vpack.c.bf16 %v2789_v16, %v2784_v20  ;;  %v2622_v24 = vpop.f32.mrb[20].mxu0  ;;  %v3713_v21 = vpop.f32.mrb[32].mxu1 }
 0x23b   :  { %v3884_v18 = vadd.f32 %v2622_v24, %v1663_v32  ;;  %v2624_v25 = vpop.f32.mrb[21].mxu0  ;;  %v3714_v49 = vpop.f32.mrb[33].mxu1 }
 0x23c   :  { %v3885_v33 = vadd.f32 %v2624_v25, %v1667_v0  ;;  %v3715_v28 = vadd.f32 %v3714_v49, %v3713_v21  ;;  %v2626_v6 = vpop.f32.mrb[22].mxu0  ;;  %v3716_v58 = vpop.f32.mrb[34].mxu1  ;;  %3226 = vmatprep.mubr.bf16.mxu0 %v2814_v12 }
 0x23d   :  { %v3886_v34 = vadd.f32 %v2626_v6, %v1683_v43  ;;  %v2628_v35 = vpop.f32.mrb[23].mxu0  ;;  %v3717_v51 = vpop.f32.mrb[35].mxu1  ;;  %3227 = vmatmul.mubr.bf16.gmra.mrb[40].mxu0 %v2813_v62  ;;  %v2793_v60 = vmax.f32 %v3884_v18, 0.0 }
 0x23e   :  { %v3887_v32 = vadd.f32 %v2628_v35, %v1687_v7  ;;  %v3718_v5 = vadd.f32 %v3717_v51, %v3716_v58  ;;  %v2682_v36 = vadd.f32 %v3715_v28, %v1631_v10  ;;  %v2794_v42 = vmax.f32 %v3885_v33, 0.0 }
 0x23f   :  { %v2798_v30 = vmax.f32 %v3886_v34, 0.0 }
 0x240   :  { %v2799_v22 = vmax.f32 %v3887_v32, 0.0  ;;  %v2685_v41 = vadd.f32 %v3718_v5, %v1651_v37 }
 0x241   :  { %v2818_v63 = vpack.c.bf16 %v2798_v30, %v2793_v60 }
 0x242   :  { %v2819_v48 = vpack.c.bf16 %v2799_v22, %v2794_v42  ;;  %v3719_v45 = vpop.f32.mrb[36].mxu1  ;;  %v3832_v54 = vpop.f32.mrb[24].mxu0 }
 0x243   :  { %v2739_v17 = vadd.f32 %v3832_v54, %v2674_v14  ;;  %v3720_v43 = vpop.f32.mrb[37].mxu1  ;;  %v2730_v40 = vpop.f32.mrb[25].mxu0 }
 0x244   :  { %v3721_v47 = vadd.f32 %v3720_v43, %v3719_v45  ;;  %v2731_v50 = vadd.f32 %v2730_v40, %v4869_v38  ;;  %v3722_v46 = vpop.f32.mrb[38].mxu1  ;;  %v3833_v1 = vpop.f32.mrb[26].mxu0  ;;  %3234 = vmatprep.mubr.bf16.mxu0 %v2819_v48 }
 0x245   :  { %v2742_v2 = vadd.f32 %v3833_v1, %v2677_v23  ;;  %v3723_v3 = vpop.f32.mrb[39].mxu1  ;;  %v2733_v59 = vpop.f32.mrb[27].mxu0  ;;  %3235 = vmatmul.mubr.bf16.gmra.mrb[44].mxu0 %v2818_v63  ;;  %v2775_v26 = vmax.f32 %v2739_v17, 0.0 }
 0x246   :  { %v3724_v8 = vadd.f32 %v3723_v3, %v3722_v46  ;;  %v2734_v9 = vadd.f32 %v2733_v59, %v4873_v44  ;;  %v2690_v11 = vadd.f32 %v3721_v47, %v1671_v29  ;;  %v2765_v38 = vmax.f32 %v2731_v50, 0.0 }
 0x247   :  { %v2780_v39 = vmax.f32 %v2742_v2, 0.0 }
 0x248   :  { %v2770_v15 = vmax.f32 %v2734_v9, 0.0  ;;  %v2693_v55 = vadd.f32 %v3724_v8, %v1691_v52 }
 0x249   :  { %v2810_v53 = vpack.c.bf16 %v2780_v39, %v2775_v26 }
 0x24a   :  { %v2805_v61 = vpack.c.bf16 %v2770_v15, %v2765_v38  ;;  %v3836_v27 = vpop.f32.mrb[28].mxu0 }
 0x24b   :  { %v2755_v13 = vadd.f32 %v3836_v27, %v2690_v11  ;;  %v2746_v14 = vpop.f32.mrb[29].mxu0 }
 0x24c   :  { %v2747_v56 = vadd.f32 %v2746_v14, %v2682_v36  ;;  %v3837_v19 = vpop.f32.mrb[30].mxu0  ;;  %3844 = vmatprep.mubr.msk.bf16.mxu1 %vm3097_vm12, %v2805_v61 }
 0x24d   :  { %v2758_v44 = vadd.f32 %v3837_v19, %v2693_v55  ;;  %v2749_v57 = vpop.f32.mrb[31].mxu0  ;;  %3845 = vmatmul.mubr.msk.bf16.vlgmr.msra.gmra.mrb[56].mxu1 %vm3097_vm12, %v2810_v53  ;;  %v2795_v31 = vmax.f32 %v2755_v13, 0.0 }
 0x24e   :  { %v2750_v4 = vadd.f32 %v2749_v57, %v2685_v41  ;;  %v2785_v16 = vmax.f32 %v2747_v56, 0.0 }
 0x24f   :  { %v2800_v20 = vmax.f32 %v2758_v44, 0.0 }
 0x250   :  { %v2790_v23 = vmax.f32 %v2750_v4, 0.0 }
 0x251   :  { %v2820_v62 = vpack.c.bf16 %v2800_v20, %v2795_v31 }
 0x252   :  { %v2815_v12 = vpack.c.bf16 %v2790_v23, %v2785_v16 }
 0x254   :  { %3848 = vmatprep.mubr.msk.bf16.mxu1 %vm3097_vm12, %v2815_v12 }
 0x255   :  { %3849 = vmatmul.mubr.msk.bf16.gmra.mrb[60].mxu1 %vm3097_vm12, %v2820_v62 }
 0x2e8   :  { %v3747_v24 = vpop.f32.mrb[40].mxu1 }
 0x2e9   :  { %v3748_v21 = vpop.f32.mrb[41].mxu1 }
 0x2ea   :  { %v3749_v0 = vadd.f32 %v3748_v21, %v3747_v24  ;;  %v3750_v18 = vpop.f32.mrb[42].mxu1 }
 0x2eb   :  { %v3751_v25 = vpop.f32.mrb[43].mxu1 }
 0x2ec   :  { %v3752_v49 = vadd.f32 %v3751_v25, %v3750_v18 }
 0x2f0   :  { %v3753_v33 = vpop.f32.mrb[44].mxu1 }
 0x2f1   :  { %v3754_v28 = vpop.f32.mrb[45].mxu1 }
 0x2f2   :  { %v3755_v6 = vadd.f32 %v3754_v28, %v3753_v33  ;;  %v3756_v58 = vpop.f32.mrb[46].mxu1 }
 0x2f3   :  { %v3757_v7 = vpop.f32.mrb[47].mxu1 }
 0x2f4   :  { %v3758_v10 = vadd.f32 %v3757_v7, %v3756_v58 }
 0x2f8   :  { %v3759_v34 = vpop.f32.mrb[48].mxu1 }
 0x2f9   :  { %v3760_v35 = vpop.f32.mrb[49].mxu1 }
 0x2fa   :  { %v3761_v51 = vadd.f32 %v3760_v35, %v3759_v34  ;;  %v3762_v32 = vpop.f32.mrb[50].mxu1 }
 0x2fb   :  { %v3763_v5 = vpop.f32.mrb[51].mxu1 }
 0x2fc   :  { %v3764_v36 = vadd.f32 %v3763_v5, %v3762_v32 }
 0x300   :  { %v3765_v37 = vpop.f32.mrb[52].mxu1  ;;  %v3787_v60 = vpop.f32.mrb[32].mxu0 }
 0x301   :  { %v3766_v30 = vpop.f32.mrb[53].mxu1  ;;  %v3788_v42 = vpop.f32.mrb[33].mxu0 }
 0x302   :  { %v3767_v22 = vadd.f32 %v3766_v30, %v3765_v37  ;;  %v3789_v41 = vadd.f32 %v3788_v42, %v3787_v60  ;;  %v3768_v63 = vpop.f32.mrb[54].mxu1  ;;  %v3790_v48 = vpop.f32.mrb[34].mxu0 }
 0x303   :  { %v3769_v45 = vpop.f32.mrb[55].mxu1  ;;  %v3791_v54 = vpop.f32.mrb[35].mxu0 }
 0x304   :  { %v3770_v17 = vadd.f32 %v3769_v45, %v3768_v63  ;;  %v3792_v43 = vadd.f32 %v3791_v54, %v3790_v48  ;;  %v3213_v40 = vadd.f32 %v3789_v41, %v3749_v0 }
 0x306   :  { %v3216_v47 = vadd.f32 %v3792_v43, %v3752_v49 }
 0x308   :  { %v3793_v50 = vpop.f32.mrb[36].mxu0 }
 0x309   :  { %v3794_v46 = vpop.f32.mrb[37].mxu0 }
 0x30a   :  { %v3795_v1 = vadd.f32 %v3794_v46, %v3793_v50  ;;  %v3796_v29 = vpop.f32.mrb[38].mxu0 }
 0x30b   :  { %v3797_v2 = vpop.f32.mrb[39].mxu0 }
 0x30c   :  { %v3798_v3 = vadd.f32 %v3797_v2, %v3796_v29  ;;  %v3221_v59 = vadd.f32 %v3795_v1, %v3755_v6 }
 0x30e   :  { %v3224_v8 = vadd.f32 %v3798_v3, %v3758_v10 }
 0x310   :  { %v3799_v9 = vpop.f32.mrb[40].mxu0 }
 0x311   :  { %v3800_v11 = vpop.f32.mrb[41].mxu0 }
 0x312   :  { %v3801_v52 = vadd.f32 %v3800_v11, %v3799_v9  ;;  %v3802_v26 = vpop.f32.mrb[42].mxu0 }
 0x313   :  { %v3803_v39 = vpop.f32.mrb[43].mxu0 }
 0x314   :  { %v3804_v38 = vadd.f32 %v3803_v39, %v3802_v26  ;;  %v3229_v15 = vadd.f32 %v3801_v52, %v3761_v51 }
 0x316   :  { %v3232_v55 = vadd.f32 %v3804_v38, %v3764_v36 }
 0x318   :  { %v3805_v53 = vpop.f32.mrb[44].mxu0 }
 0x319   :  { %v3806_v61 = vpop.f32.mrb[45].mxu0 }
 0x31a   :  { %v3807_v27 = vadd.f32 %v3806_v61, %v3805_v53  ;;  %v3808_v13 = vpop.f32.mrb[46].mxu0 }
 0x31b   :  { %v3809_v14 = vpop.f32.mrb[47].mxu0 }
 0x31c   :  { %v3810_v56 = vadd.f32 %v3809_v14, %v3808_v13  ;;  %v3237_v19 = vadd.f32 %v3807_v27, %v3767_v22 }
 0x31e   :  { %v3240_v44 = vadd.f32 %v3810_v56, %v3770_v17 }
 0x320   :  { %v3846_v57 = vpop.f32.mrb[56].mxu1 }
 0x321   :  { %v3286_v4 = vadd.f32 %v3846_v57, %v3221_v59  ;;  %v3277_v31 = vpop.f32.mrb[57].mxu1 }
 0x322   :  { %v3278_v20 = vadd.f32 %v3277_v31, %v3213_v40  ;;  %v3847_v16 = vpop.f32.mrb[58].mxu1 }
 0x323   :  { %v3320_v23 = vrot.slane %v3286_v4, 4  ;;  %v3289_v62 = vadd.f32 %v3847_v16, %v3224_v8  ;;  %v3280_v12 = vpop.f32.mrb[59].mxu1 }
 0x324   :  { %v3308_v24 = vrot.slane %v3278_v20, 4  ;;  %v3281_v21 = vadd.f32 %v3280_v12, %v3216_v47 }
 0x325   :  { %v3321_v0 = vmax.f32 %v3286_v4, %v3320_v23  ;;  %v3326_v18 = vrot.slane %v3289_v62, 4 }
 0x326   :  { %v3309_v25 = vmax.f32 %v3278_v20, %v3308_v24  ;;  %v3314_v49 = vrot.slane %v3281_v21, 4 }
 0x327   :  { %v3322_v33 = vrot.slane %v3321_v0, 2  ;;  %v3327_v28 = vmax.f32 %v3289_v62, %v3326_v18 }
 0x328   :  { %v3310_v6 = vrot.slane %v3309_v25, 2  ;;  %v3315_v58 = vmax.f32 %v3281_v21, %v3314_v49  ;;  %v3850_v7 = vpop.f32.mrb[60].mxu1 }
 0x329   :  { %v3323_v10 = vmax.f32 %v3321_v0, %v3322_v33  ;;  %v3328_v34 = vrot.slane %v3327_v28, 2  ;;  %v3302_v35 = vadd.f32 %v3850_v7, %v3237_v19  ;;  %v3293_v51 = vpop.f32.mrb[61].mxu1 }
 0x32a   :  { %v3311_v32 = vmax.f32 %v3309_v25, %v3310_v6  ;;  %v3316_v5 = vrot.slane %v3315_v58, 2  ;;  %v3294_v36 = vadd.f32 %v3293_v51, %v3229_v15  ;;  %v3851_v37 = vpop.f32.mrb[62].mxu1 }
 0x32b   :  { %v3329_v60 = vmax.f32 %v3327_v28, %v3328_v34  ;;  %v3344_v30 = vrot.slane %v3302_v35, 4  ;;  %v3305_v42 = vadd.f32 %v3851_v37, %v3240_v44  ;;  %v3296_v22 = vpop.f32.mrb[63].mxu1  ;;  %v3324_v54 = vrot.slane %v3323_v10, 1 }
 0x32c   :  { %v3312_v41 = vrot.slane %v3311_v32, 1  ;;  %v3317_v63 = vmax.f32 %v3315_v58, %v3316_v5  ;;  %v3332_v48 = vrot.slane %v3294_v36, 4  ;;  %v3297_v45 = vadd.f32 %v3296_v22, %v3232_v55 }
 0x32d   :  { %v3345_v17 = vmax.f32 %v3302_v35, %v3344_v30  ;;  %v3350_v43 = vrot.slane %v3305_v42, 4  ;;  %v3330_v40 = vrot.slane %v3329_v60, 1  ;;  %v3325_v9 = vmax.f32 %v3323_v10, %v3324_v54 }
 0x32e   :  { %v3318_v47 = vrot.slane %v3317_v63, 1  ;;  %v3333_v50 = vmax.f32 %v3294_v36, %v3332_v48  ;;  %v3338_v46 = vrot.slane %v3297_v45, 4  ;;  %v3313_v2 = vmax.f32 %v3311_v32, %v3312_v41 }
 0x32f   :  { %v3346_v1 = vrot.slane %v3345_v17, 2  ;;  %v3351_v29 = vmax.f32 %v3305_v42, %v3350_v43  ;;  %v3331_v26 = vmax.f32 %v3329_v60, %v3330_v40 }
 0x330   :  { %v3319_v3 = vmax.f32 %v3317_v63, %v3318_v47  ;;  %v3334_v59 = vrot.slane %v3333_v50, 2  ;;  %v3339_v8 = vmax.f32 %v3297_v45, %v3338_v46 }
 0x331   :  { %v3347_v11 = vmax.f32 %v3345_v17, %v3346_v1  ;;  %v3352_v52 = vrot.slane %v3351_v29, 2 }
 0x332   :  { %v3364_v39 = vsel %vm656_vm2, %v3319_v3, %v3313_v2  ;;  %v3335_v38 = vmax.f32 %v3333_v50, %v3334_v59  ;;  %v3340_v15 = vrot.slane %v3339_v8, 2 }
 0x333   :  { %v3365_v55 = vsel %vm658_vm3, %v3325_v9, %v3364_v39  ;;  %v3353_v53 = vmax.f32 %v3351_v29, %v3352_v52  ;;  %v3348_v14 = vrot.slane %v3347_v11, 1 }
 0x334   :  { %v3336_v61 = vrot.slane %v3335_v38, 1  ;;  %v3341_v27 = vmax.f32 %v3339_v8, %v3340_v15  ;;  %v3366_v13 = vsel %vm660_vm4, %v3331_v26, %v3365_v55 }
 0x335   :  { %v3354_v19 = vrot.slane %v3353_v53, 1  ;;  %v3349_v31 = vmax.f32 %v3347_v11, %v3348_v14 }
 0x336   :  { %v3337_v56 = vmax.f32 %v3335_v38, %v3336_v61  ;;  %v3342_v44 = vrot.slane %v3341_v27, 1 }
 0x337   :  { %v3355_v20 = vmax.f32 %v3353_v53, %v3354_v19 }
 0x338   :  { %v3343_v57 = vmax.f32 %v3341_v27, %v3342_v44  ;;  %v3367_v4 = vsel %vm662_vm5, %v3337_v56, %v3366_v13 }
 0x33a   :  { %v3368_v16 = vsel %vm664_vm6, %v3343_v57, %v3367_v4 }
 0x33b   :  { %v3369_v23 = vsel %vm666_vm7, %v3349_v31, %v3368_v16 }
 0x33c   :  { %v3370_v62 = vsel %vm668_vm8, %v3355_v20, %v3369_v23 }
 0x33d   :  { %3372 = vst [vmem:[#allocation10] sm:$0xff] %v3370_v62 }
 0x33e   :  { %4370 = shalt.err (!%p4367_p8)
}
 0x33f   :  { %s4371_s23 = scalar_lea.hbm %s4935_s5, 128 }
 0x340   :  { %p4372_p9 = scmp.ne.s32.totalorder %s4935_s5, %s4371_s23  ;;  %p4375_p10 = scmp.lt.u32.totalorder %s4371_s23, %s4935_s5 }
 0x342   :  { %p4377_p11 = pnand %p4375_p10, %p4372_p9 }
 0x344   :  { %4380 = shalt.err (!%p4377_p11)
}
 0x345   :  { %3382 = dma.vmem_to_hbm [thread:$0]  %s3380_s19, 128, %s4935_s5, [#allocation4]  }
 0x346   :  { %4387 = dma.done.wait [#allocation4], 128  }
 0x347   :  { %4388 = vsyncadd [#allocation4], 4294967168 }
 0x348   :  { %3386 = vsyncpa [#allocation3], 1 }
 0x349   :  { %3387 = vsyncpa [#allocation6], 1 }
 0x34a   :  { %3388 = vsyncpa [#allocation9], 1 }
 0x34b   :  { %3389 = vsyncpa [#allocation4], 1 }

</bundles_post_ra>
